<compile_context>
chip_gen: v5e
topology: v5e:2x2
jax: 0.10.0
libtpu: 0.0.40
codegen_flags: <defaults>
</compile_context>

<pallas_src>
import functools

import jax
import jax.numpy as jnp
from jax.experimental import pallas as pl
from jax.experimental.pallas import tpu as pltpu

EPS = 1e-5
LANE = 128
MAX_TILE_K = 512                    # K-blocking kicks in only above this
MAX_TILE_M = 2048                   # ~86% of HBM roofline already at 1-2k rows
VMEM_BUDGET = 40 * 1024 * 1024      # tile-sizing budget (v7x-safe)
VMEM_CLAMP = 48 * 1024 * 1024       # scoped-VMEM limit clamp (v7x phys = 64 MiB)


def _round_up(x, m):
    return (x + m - 1) // m * m


# ---------------------------------------------------------------------------
# Pass 1: conv matmul per (M, K) tile -> per-tile per-channel (sum, sumsq)
# ---------------------------------------------------------------------------
def _conv_stats_kernel(a_ref, w_ref, stats_ref, acc_ref):
    # a_ref:     (tile_m, tile_k)   im2col patches (compute dtype)
    # w_ref:     (tile_k, c_pad)    reshaped conv weights (compute dtype)
    # stats_ref: (1, 2, c_pad)      f32 per-tile [sum; sumsq] partials
    # acc_ref:   (tile_m, c_pad)    f32 conv accumulator (VMEM scratch)
    kk = pl.program_id(1)

    @pl.when(kk == 0)
    def _():
        acc_ref[...] = jnp.zeros_like(acc_ref)

    acc_ref[...] += jnp.dot(a_ref[...], w_ref[...],
                            preferred_element_type=jnp.float32)

    @pl.when(kk == pl.num_programs(1) - 1)
    def _():
        conv = acc_ref[...]                                   # (tile_m, c_pad)
        s = jnp.sum(conv, axis=0, keepdims=True)              # (1, c_pad)
        sq = jnp.sum(conv * conv, axis=0, keepdims=True)      # (1, c_pad)
        stats_ref[:, 0:1, :] = s[None]
        stats_ref[:, 1:2, :] = sq[None]


# ---------------------------------------------------------------------------
# Pass 2: recompute conv tile, fold BN (batch stats) + ReLU, write unpadded out
# ---------------------------------------------------------------------------
def _conv_bn_relu_kernel(a_ref, w_ref, stats_ref, o_ref, acc_ref, *, inv_m):
    # stats_ref: (grid_m, 2, c_pad) f32 partials (resident, constant index map)
    # o_ref:     (tile_m, cout)     final ReLU(BN(conv)) rows in NHWC order
    kk = pl.program_id(1)

    @pl.when(kk == 0)
    def _():
        acc_ref[...] = jnp.zeros_like(acc_ref)

    acc_ref[...] += jnp.dot(a_ref[...], w_ref[...],
                            preferred_element_type=jnp.float32)

    @pl.when(kk == pl.num_programs(1) - 1)
    def _():
        tot = jnp.sum(stats_ref[...], axis=0)                 # (2, c_pad) f32
        mean = tot[0:1, :] * inv_m
        var = jnp.maximum(tot[1:2, :] * inv_m - mean * mean, 0.0)  # biased var
        inv_std = jax.lax.rsqrt(var + EPS)                    # EUP rsqrt
        y = acc_ref[...] * inv_std - mean * inv_std
        y = jnp.maximum(y, 0.0)
        o_ref[...] = y[:, : o_ref.shape[-1]].astype(o_ref.dtype)


# ---------------------------------------------------------------------------
# Wrapper
# ---------------------------------------------------------------------------
def im2col(x, kh, kw, stride, padding):
    n, cin, h, w = x.shape
    oh = (h + 2 * padding - kh) // stride + 1
    ow = (w + 2 * padding - kw) // stride + 1
    xp = jnp.pad(x, ((0, 0), (0, 0), (padding, padding), (padding, padding)))
    cols = []
    for i in range(kh):
        for j in range(kw):
            patch = xp[:, :, i:i + stride * oh:stride, j:j + stride * ow:stride]
            cols.append(patch)  # (N, Cin, OH, OW)
    stacked = jnp.stack(cols, axis=0).reshape(kh, kw, n, cin, oh, ow)
    stacked = jnp.transpose(stacked, (2, 4, 5, 3, 0, 1))  # N, OH, OW, Cin, KH, KW
    patches = stacked.reshape(n * oh * ow, cin * kh * kw)
    return patches, oh, ow


def _choose_tile_m(m, tile_k, c_pad, itemsize):
    # Per-step VMEM: A block (dbl-buffered) + weight block (dbl-buffered) +
    # f32 accumulator + lane-padded output block (dbl-buffered) + headroom.
    fixed = 2 * tile_k * c_pad * itemsize + (2 << 20)
    per_row = 2 * tile_k * itemsize + c_pad * 4 + 2 * LANE * 4
    tile_m = int((VMEM_BUDGET - fixed) // per_row)
    tile_m = max(16, min(tile_m, MAX_TILE_M))
    tile_m = (tile_m // 16) * 16
    m16 = _round_up(m, 16)
    return m16 if m16 <= tile_m else tile_m      # whole M in one step if it fits


def _vmem_limit(tile_m, tile_k, c_pad, grid_m, itemsize):
    need = (2 * tile_m * tile_k * itemsize       # A blocks (double-buffered)
            + 2 * tile_k * c_pad * itemsize      # weight blocks
            + tile_m * c_pad * 4                 # f32 accumulator scratch
            + 2 * tile_m * LANE * 4              # output block (lane-padded in VMEM)
            + 2 * grid_m * 2 * c_pad * 4         # stats partials
            + (2 << 20))                         # headroom
    return int(min(max(need, 32 * 1024 * 1024), VMEM_CLAMP))


def conv_batch_relu(x, weight, bias, *, stride, padding,
                    tile_m=None, compute_dtype=jnp.float32):
    """x: (N, Cin, H, W) f32; weight: (Cout, Cin, KH, KW); bias: (Cout,)."""
    # BatchNorm2d(affine=False) subtracts the per-channel batch mean right after
    # the conv, so the per-channel conv bias cancels exactly -> drop it.
    del bias

    n, cin, h, w = x.shape
    cout, _, kh, kw = weight.shape

    patches, oh, ow = im2col(x, kh, kw, stride, padding)      # (M, K) f32
    m = n * oh * ow
    k = cin * kh * kw

    c_pad = _round_up(cout, LANE)     # MXU/stats lane width only; never hits HBM

    if k <= MAX_TILE_K:               # single K block: keep K unpadded in HBM
        tile_k, k_eff, grid_k = k, k, 1
    else:                             # K-blocking bounds VMEM at large Cin*KH*KW
        tile_k = MAX_TILE_K
        k_eff = _round_up(k, tile_k)
        grid_k = k_eff // tile_k

    itemsize = jnp.dtype(compute_dtype).itemsize
    if tile_m is None:
        tile_m = _choose_tile_m(m, tile_k, c_pad, itemsize)
    tile_m = max(16, (int(tile_m) // 16) * 16)
    m_pad = _round_up(m, tile_m)
    grid_m = m_pad // tile_m

    # Zero-padded rows/cols contribute exactly 0 to both the dot and the stats.
    a = patches.astype(compute_dtype)
    if m_pad > m or k_eff > k:
        a = jnp.pad(a, ((0, m_pad - m), (0, k_eff - k)))
    w_mat = jnp.pad(weight.reshape(cout, k).T.astype(compute_dtype),
                    ((0, k_eff - k), (0, c_pad - cout)))

    vmem = _vmem_limit(tile_m, tile_k, c_pad, grid_m, itemsize)

    a_spec = pl.BlockSpec((tile_m, tile_k), lambda i, kk: (i, kk))
    w_spec = pl.BlockSpec((tile_k, c_pad), lambda i, kk: (kk, 0))

    # ---- Pass 1: per-tile per-channel (sum, sumsq) partials --------------------
    stats = pl.pallas_call(
        _conv_stats_kernel,
        grid_spec=pltpu.PrefetchScalarGridSpec(
            num_scalar_prefetch=0,
            grid=(grid_m, grid_k),
            in_specs=[a_spec, w_spec],
            out_specs=pl.BlockSpec((1, 2, c_pad), lambda i, kk: (i, 0, 0)),
            scratch_shapes=[pltpu.VMEM((tile_m, c_pad), jnp.float32)],
        ),
        out_shape=jax.ShapeDtypeStruct((grid_m, 2, c_pad), jnp.float32),
        compiler_params=pltpu.CompilerParams(
            dimension_semantics=("parallel", "arbitrary"),
            vmem_limit_bytes=vmem),
    )(a, w_mat)

    # ---- Pass 2: conv recompute + in-kernel finalize + BN + ReLU ---------------
    out2d = pl.pallas_call(
        functools.partial(_conv_bn_relu_kernel, inv_m=1.0 / float(m)),
        grid_spec=pltpu.PrefetchScalarGridSpec(
            num_scalar_prefetch=0,
            grid=(grid_m, grid_k),
            in_specs=[a_spec, w_spec,
                      pl.BlockSpec((grid_m, 2, c_pad), lambda i, kk: (0, 0, 0))],
            out_specs=pl.BlockSpec((tile_m, cout), lambda i, kk: (i, 0)),
            scratch_shapes=[pltpu.VMEM((tile_m, c_pad), jnp.float32)],
        ),
        out_shape=jax.ShapeDtypeStruct((m_pad, cout), jnp.float32),
        compiler_params=pltpu.CompilerParams(
            dimension_semantics=("parallel", "arbitrary"),
            vmem_limit_bytes=vmem),
    )(a, w_mat, stats)

    # Tiny epilogue on the real-size (m, cout) output only (16x smaller than the
    # old padded slab).
    # TODO(synk): emit NCHW directly from pass 2 (per-image tiles + in-kernel
    # transpose) to drop this last XLA transpose of the activations.
    out = out2d[:m].reshape(n, oh, ow, cout)
    return jnp.transpose(out, (0, 3, 1, 2))                   # -> NCHW


# ---------------------------------------------------------------------------
# Pure-JAX reference (matches the PyTorch module, including the bias)
# ---------------------------------------------------------------------------
def reference(x, weight, bias, stride, padding):
    conv = jax.lax.conv_general_dilated(
        x, weight,
        window_strides=(stride, stride),
        padding=[(padding, padding), (padding, padding)],
        dimension_numbers=("NCHW", "OIHW", "NCHW"),
    ) + bias.reshape(1, -1, 1, 1)
    mean = jnp.mean(conv, axis=(0, 2, 3), keepdims=True)
    var = jnp.mean((conv - mean) ** 2, axis=(0, 2, 3), keepdims=True)
    y = (conv - mean) * jax.lax.rsqrt(var + EPS)
    return jnp.maximum(y, 0.0)


if __name__ == "__main__":
    in_d, out_d, kernel_size, stride, padding = 4, 8, 3, 1, 1
    N, H, W = 2, 16, 16

    key = jax.random.PRNGKey(0)
    kx, kwt, kb = jax.random.split(key, 3)
    x = jax.random.normal(kx, (N, in_d, H, W), dtype=jnp.float32)
    weight = 0.1 * jax.random.normal(
        kwt, (out_d, in_d, kernel_size, kernel_size), dtype=jnp.float32)
    bias = 0.1 * jax.random.normal(kb, (out_d,), dtype=jnp.float32)

    ref = jax.block_until_ready(reference(x, weight, bias, stride, padding))

    # f32 path (bit-accurate module semantics; auto tile_m -> one grid step here).
    fwd_f32 = jax.jit(functools.partial(
        conv_batch_relu, stride=stride, padding=padding,
        compute_dtype=jnp.float32))
    out = jax.block_until_ready(fwd_f32(x, weight, bias))
    assert out.shape == ref.shape
    assert jnp.allclose(out, ref, atol=1e-4, rtol=1e-4), \
        float(jnp.max(jnp.abs(out - ref)))

    # bf16-operand path (halves A-tile HBM reads + VMEM; f32 accumulation/stats).
    fwd_bf16 = jax.jit(functools.partial(
        conv_batch_relu, stride=stride, padding=padding,
        compute_dtype=jnp.bfloat16))
    out_bf16 = jax.block_until_ready(fwd_bf16(x, weight, bias))
    assert jnp.allclose(out_bf16, ref, atol=6e-2, rtol=6e-2), \
        float(jnp.max(jnp.abs(out_bf16 - ref)))

    print("KERNEL_OK")
</pallas_src>

<mosaic_0001>
module attributes {stable_mosaic.version = 11 : i64} {
  func.func @_conv_stats_kernel(%arg0: i32, %arg1: i32, %arg2: memref<512x36xf32, #tpu.memory_space<vmem>>, %arg3: memref<36x128xf32, #tpu.memory_space<vmem>>, %arg4: memref<1x2x128xf32, #tpu.memory_space<vmem>>, %arg5: memref<512x128xf32, #tpu.memory_space<vmem>>) attributes {dimension_semantics = [#tpu.dimension_semantics<parallel>, #tpu.dimension_semantics<arbitrary>], iteration_bounds = array<i64: 1, 1>, scalar_prefetch = 0 : i64, scratch_operands = 1 : i64, tpu.core_type = #tpu.core_type<tc>, window_params = [{transform_indices = @transform_0, window_bounds = array<i64: 512, 36>}, {transform_indices = @transform_1, window_bounds = array<i64: 36, 128>}, {transform_indices = @transform_2, window_bounds = array<i64: 1, 2, 128>}]} {
    %c0_i32 = arith.constant 0 : i32
    %0 = arith.cmpi eq, %arg1, %c0_i32 : i32
    %1 = arith.extui %0 : i1 to i32
    %c0_i32_0 = arith.constant 0 : i32
    %2 = arith.cmpi ne, %1, %c0_i32_0 : i32
    scf.if %2 {
      %cst_10 = arith.constant 0.000000e+00 : f32
      %12 = vector.broadcast %cst_10 : f32 to vector<512x128xf32>
      %c0_11 = arith.constant 0 : index
      %c0_12 = arith.constant 0 : index
      %13 = vector.load %arg5[%c0_11, %c0_12] : memref<512x128xf32, #tpu.memory_space<vmem>>, vector<512x128xf32>
      tpu.vector_store %arg5[%c0_11, %c0_12], %12 {strides = array<i32>} : memref<512x128xf32, #tpu.memory_space<vmem>>, vector<512x128xf32>,
    } else {
    }
    %c0 = arith.constant 0 : index
    %c0_1 = arith.constant 0 : index
    %3 = vector.load %arg5[%c0, %c0_1] : memref<512x128xf32, #tpu.memory_space<vmem>>, vector<512x128xf32>
    %c0_2 = arith.constant 0 : index
    %c0_3 = arith.constant 0 : index
    %4 = vector.load %arg2[%c0_2, %c0_3] : memref<512x36xf32, #tpu.memory_space<vmem>>, vector<512x36xf32>
    %c0_4 = arith.constant 0 : index
    %c0_5 = arith.constant 0 : index
    %5 = vector.load %arg3[%c0_4, %c0_5] : memref<36x128xf32, #tpu.memory_space<vmem>>, vector<36x128xf32>
    %cst = arith.constant dense<0.000000e+00> : vector<512x128xf32>
    %6 = tpu.matmul %4, %5, %cst {dimension_numbers = #tpu.dot_dimension_numbers<[1], [0], [0], [1], [0, 0, 1, 1], [], []>} : vector<512x36xf32>, vector<36x128xf32>, vector<512x128xf32> -> vector<512x128xf32>
    %7 = arith.addf %3, %6 : vector<512x128xf32>
    %c0_6 = arith.constant 0 : index
    %c0_7 = arith.constant 0 : index
    %8 = vector.load %arg5[%c0_6, %c0_7] : memref<512x128xf32, #tpu.memory_space<vmem>>, vector<512x128xf32>
    tpu.vector_store %arg5[%c0_6, %c0_7], %7 {strides = array<i32>} : memref<512x128xf32, #tpu.memory_space<vmem>>, vector<512x128xf32>,
    %c0_i32_8 = arith.constant 0 : i32
    %9 = arith.cmpi eq, %arg1, %c0_i32_8 : i32
    %10 = arith.extui %9 : i1 to i32
    %c0_i32_9 = arith.constant 0 : i32
    %11 = arith.cmpi ne, %10, %c0_i32_9 : i32
    scf.if %11 {
      %c0_10 = arith.constant 0 : index
      %c0_11 = arith.constant 0 : index
      %12 = vector.load %arg5[%c0_10, %c0_11] : memref<512x128xf32, #tpu.memory_space<vmem>>, vector<512x128xf32>
      %cst_12 = arith.constant dense<0.000000e+00> : vector<128xf32>
      %13 = vector.multi_reduction <add>, %12, %cst_12 [0] : vector<512x128xf32> to vector<128xf32>
      %14 = vector.shape_cast %13 : vector<128xf32> to vector<1x128xf32>
      %15 = arith.mulf %12, %12 : vector<512x128xf32>
      %cst_13 = arith.constant dense<0.000000e+00> : vector<128xf32>
      %16 = vector.multi_reduction <add>, %15, %cst_13 [0] : vector<512x128xf32> to vector<128xf32>
      %17 = vector.shape_cast %16 : vector<128xf32> to vector<1x128xf32>
      %18 = vector.shape_cast %14 : vector<1x128xf32> to vector<1x1x128xf32>
      %c0_14 = arith.constant 0 : index
      %c0_15 = arith.constant 0 : index
      %c0_16 = arith.constant 0 : index
      %19 = vector.load %arg4[%c0_14, %c0_15, %c0_16] : memref<1x2x128xf32, #tpu.memory_space<vmem>>, vector<1x1x128xf32>
      tpu.vector_store %arg4[%c0_14, %c0_15, %c0_16], %18 {strides = array<i32>} : memref<1x2x128xf32, #tpu.memory_space<vmem>>, vector<1x1x128xf32>,
      %20 = vector.shape_cast %17 : vector<1x128xf32> to vector<1x1x128xf32>
      %c0_17 = arith.constant 0 : index
      %c1 = arith.constant 1 : index
      %c0_18 = arith.constant 0 : index
      %21 = vector.load %arg4[%c0_17, %c1, %c0_18] : memref<1x2x128xf32, #tpu.memory_space<vmem>>, vector<1x1x128xf32>
      tpu.vector_store %arg4[%c0_17, %c1, %c0_18], %20 {strides = array<i32>} : memref<1x2x128xf32, #tpu.memory_space<vmem>>, vector<1x1x128xf32>,
    } else {
    }
    return
  }
  func.func @transform_0(%arg0: i32, %arg1: i32) -> (i32, i32) {
    %c0_i32 = arith.constant 0 : i32
    return %arg0, %arg1 : i32, i32
  }
  func.func @transform_1(%arg0: i32, %arg1: i32) -> (i32, i32) {
    %c0_i32 = arith.constant 0 : i32
    %c0_i32_0 = arith.constant 0 : i32
    return %arg1, %c0_i32 : i32, i32
  }
  func.func @transform_2(%arg0: i32, %arg1: i32) -> (i32, i32, i32) {
    %c0_i32 = arith.constant 0 : i32
    %c0_i32_0 = arith.constant 0 : i32
    %c0_i32_1 = arith.constant 0 : i32
    return %arg0, %c0_i32, %c0_i32_0 : i32, i32, i32
  }
}

module attributes {stable_mosaic.version = 11 : i64} {
  func.func @_conv_bn_relu_kernel(%arg0: i32, %arg1: i32, %arg2: memref<512x36xf32, #tpu.memory_space<vmem>>, %arg3: memref<36x128xf32, #tpu.memory_space<vmem>>, %arg4: memref<1x2x128xf32, #tpu.memory_space<vmem>>, %arg5: memref<512x8xf32, #tpu.memory_space<vmem>>, %arg6: memref<512x128xf32, #tpu.memory_space<vmem>>) attributes {dimension_semantics = [#tpu.dimension_semantics<parallel>, #tpu.dimension_semantics<arbitrary>], iteration_bounds = array<i64: 1, 1>, scalar_prefetch = 0 : i64, scratch_operands = 1 : i64, tpu.core_type = #tpu.core_type<tc>, window_params = [{transform_indices = @transform_0, window_bounds = array<i64: 512, 36>}, {transform_indices = @transform_1, window_bounds = array<i64: 36, 128>}, {pipeline_mode = #tpu.pipeline_mode<synchronous>, transform_indices = @transform_2, window_bounds = array<i64: 1, 2, 128>}, {transform_indices = @transform_3, window_bounds = array<i64: 512, 8>}]} {
    %c0_i32 = arith.constant 0 : i32
    %0 = arith.cmpi eq, %arg1, %c0_i32 : i32
    %1 = arith.extui %0 : i1 to i32
    %c0_i32_0 = arith.constant 0 : i32
    %2 = arith.cmpi ne, %1, %c0_i32_0 : i32
    scf.if %2 {
      %cst_10 = arith.constant 0.000000e+00 : f32
      %12 = vector.broadcast %cst_10 : f32 to vector<512x128xf32>
      %c0_11 = arith.constant 0 : index
      %c0_12 = arith.constant 0 : index
      %13 = vector.load %arg6[%c0_11, %c0_12] : memref<512x128xf32, #tpu.memory_space<vmem>>, vector<512x128xf32>
      tpu.vector_store %arg6[%c0_11, %c0_12], %12 {strides = array<i32>} : memref<512x128xf32, #tpu.memory_space<vmem>>, vector<512x128xf32>,
    } else {
    }
    %c0 = arith.constant 0 : index
    %c0_1 = arith.constant 0 : index
    %3 = vector.load %arg6[%c0, %c0_1] : memref<512x128xf32, #tpu.memory_space<vmem>>, vector<512x128xf32>
    %c0_2 = arith.constant 0 : index
    %c0_3 = arith.constant 0 : index
    %4 = vector.load %arg2[%c0_2, %c0_3] : memref<512x36xf32, #tpu.memory_space<vmem>>, vector<512x36xf32>
    %c0_4 = arith.constant 0 : index
    %c0_5 = arith.constant 0 : index
    %5 = vector.load %arg3[%c0_4, %c0_5] : memref<36x128xf32, #tpu.memory_space<vmem>>, vector<36x128xf32>
    %cst = arith.constant dense<0.000000e+00> : vector<512x128xf32>
    %6 = tpu.matmul %4, %5, %cst {dimension_numbers = #tpu.dot_dimension_numbers<[1], [0], [0], [1], [0, 0, 1, 1], [], []>} : vector<512x36xf32>, vector<36x128xf32>, vector<512x128xf32> -> vector<512x128xf32>
    %7 = arith.addf %3, %6 : vector<512x128xf32>
    %c0_6 = arith.constant 0 : index
    %c0_7 = arith.constant 0 : index
    %8 = vector.load %arg6[%c0_6, %c0_7] : memref<512x128xf32, #tpu.memory_space<vmem>>, vector<512x128xf32>
    tpu.vector_store %arg6[%c0_6, %c0_7], %7 {strides = array<i32>} : memref<512x128xf32, #tpu.memory_space<vmem>>, vector<512x128xf32>,
    %c0_i32_8 = arith.constant 0 : i32
    %9 = arith.cmpi eq, %arg1, %c0_i32_8 : i32
    %10 = arith.extui %9 : i1 to i32
    %c0_i32_9 = arith.constant 0 : i32
    %11 = arith.cmpi ne, %10, %c0_i32_9 : i32
    scf.if %11 {
      %c0_10 = arith.constant 0 : index
      %c0_11 = arith.constant 0 : index
      %c0_12 = arith.constant 0 : index
      %12 = vector.load %arg4[%c0_10, %c0_11, %c0_12] : memref<1x2x128xf32, #tpu.memory_space<vmem>>, vector<1x2x128xf32>
      %cst_13 = arith.constant dense<0.000000e+00> : vector<2x128xf32>
      %13 = vector.multi_reduction <add>, %12, %cst_13 [0] : vector<1x2x128xf32> to vector<2x128xf32>
      %14 = vector.extract_strided_slice %13 {offsets = [0, 0], sizes = [1, 128], strides = [1, 1]} : vector<2x128xf32> to vector<1x128xf32>
      %cst_14 = arith.constant 0.001953125 : f32
      %15 = vector.broadcast %cst_14 : f32 to vector<1x128xf32>
      %16 = arith.mulf %14, %15 : vector<1x128xf32>
      %17 = vector.extract_strided_slice %13 {offsets = [1, 0], sizes = [1, 128], strides = [1, 1]} : vector<2x128xf32> to vector<1x128xf32>
      %cst_15 = arith.constant 0.001953125 : f32
      %18 = vector.broadcast %cst_15 : f32 to vector<1x128xf32>
      %19 = arith.mulf %17, %18 : vector<1x128xf32>
      %20 = arith.mulf %16, %16 : vector<1x128xf32>
      %21 = arith.subf %19, %20 : vector<1x128xf32>
      %cst_16 = arith.constant 0.000000e+00 : f32
      %22 = vector.broadcast %cst_16 : f32 to vector<1x128xf32>
      %23 = arith.maximumf %21, %22 : vector<1x128xf32>
      %cst_17 = arith.constant 9.99999974E-6 : f32
      %24 = vector.broadcast %cst_17 : f32 to vector<1x128xf32>
      %25 = arith.addf %23, %24 : vector<1x128xf32>
      %26 = math.rsqrt %25 : vector<1x128xf32>
      %c0_18 = arith.constant 0 : index
      %c0_19 = arith.constant 0 : index
      %27 = vector.load %arg6[%c0_18, %c0_19] : memref<512x128xf32, #tpu.memory_space<vmem>>, vector<512x128xf32>
      %28 = vector.broadcast %26 : vector<1x128xf32> to vector<512x128xf32>
      %29 = arith.mulf %27, %28 : vector<512x128xf32>
      %30 = arith.mulf %16, %26 : vector<1x128xf32>
      %31 = vector.broadcast %30 : vector<1x128xf32> to vector<512x128xf32>
      %32 = arith.subf %29, %31 : vector<512x128xf32>
      %cst_20 = arith.constant 0.000000e+00 : f32
      %33 = vector.broadcast %cst_20 : f32 to vector<512x128xf32>
      %34 = arith.maximumf %32, %33 : vector<512x128xf32>
      %35 = vector.extract_strided_slice %34 {offsets = [0, 0], sizes = [512, 8], strides = [1, 1]} : vector<512x128xf32> to vector<512x8xf32>
      %c0_21 = arith.constant 0 : index
      %c0_22 = arith.constant 0 : index
      %36 = vector.load %arg5[%c0_21, %c0_22] : memref<512x8xf32, #tpu.memory_space<vmem>>, vector<512x8xf32>
      tpu.vector_store %arg5[%c0_21, %c0_22], %35 {strides = array<i32>} : memref<512x8xf32, #tpu.memory_space<vmem>>, vector<512x8xf32>,
    } else {
    }
    return
  }
  func.func @transform_0(%arg0: i32, %arg1: i32) -> (i32, i32) {
    %c0_i32 = arith.constant 0 : i32
    return %arg0, %arg1 : i32, i32
  }
  func.func @transform_1(%arg0: i32, %arg1: i32) -> (i32, i32) {
    %c0_i32 = arith.constant 0 : i32
    %c0_i32_0 = arith.constant 0 : i32
    return %arg1, %c0_i32 : i32, i32
  }
  func.func @transform_2(%arg0: i32, %arg1: i32) -> (i32, i32, i32) {
    %c0_i32 = arith.constant 0 : i32
    %c0_i32_0 = arith.constant 0 : i32
    %c0_i32_1 = arith.constant 0 : i32
    %c0_i32_2 = arith.constant 0 : i32
    return %c0_i32, %c0_i32_0, %c0_i32_1 : i32, i32, i32
  }
  func.func @transform_3(%arg0: i32, %arg1: i32) -> (i32, i32) {
    %c0_i32 = arith.constant 0 : i32
    %c0_i32_0 = arith.constant 0 : i32
    return %arg0, %c0_i32 : i32, i32
  }
}

</mosaic_0001>

<bundles_post_ra>
// kernel: conv_batch_relu.2
= control target key start
LH: loop header
LB: loop body
LE: loop exit
PB: predicated region body
PF: predicated region fallthrough
CT: control target
= control target key end

     0   :  { %vm405_vm0 = vcmask 1043456   ;;  %vm212_vm1 = vcmask 293888   ;;  %s1568_s1 = inlined_call_operand.vmem [shape: f32[36,128], index: 1, kind: input, shape index: {}]   ;;  %s1569_s0 = inlined_call_operand.vmem [shape: f32[512,36], index: 0, kind: input, shape index: {}]   ;;  %s1570_s2 = inlined_call_operand.vmem [shape: f32[1,2,128], index: 2, kind: output, shape index: {}]  }
   0x1   :  { %v211_v0 = vld [vmem:[%s1568_s1 + $0x20] sm:$0xf]  ;;  %v210_v1 = vld [vmem:[%s1568_s1 + $0x18] sm:$0xff]  ;;  %v209_v2 = vld [vmem:[%s1568_s1 + $0x10] sm:$0xff] }
   0x2   :  { %1021 = vmatpush.msk.msra.mxu0 %vm405_vm0, %v211_v0  ;;  %1086 = vmatpush.msk.msra.mxu1 %vm405_vm0, %v211_v0  ;;  %v208_v3 = vld [vmem:[%s1568_s1 + $0x8] sm:$0xff]  ;;  %v207_v4 = vld [vmem:[%s1568_s1] sm:$0xff]  ;;  %v145_v9 = vld [vmem:[%s1569_s0 + $0x10] sm:$0xff] }
   0x3   :  { %1087 = vmatpush.msk.msra.mxu2 %vm405_vm0, %v211_v0  ;;  %1088 = vmatpush.msk.msra.mxu3 %vm405_vm0, %v211_v0  ;;  %v143_v5 = vld [vmem:[%s1569_s0] sm:$0xff]  ;;  %v144_v7 = vld [vmem:[%s1569_s0 + $0x8] sm:$0xff]  ;;  %v161_v10 = vld [vmem:[%s1569_s0 + $0x90] sm:$0xff] }
   0x4   :  { %421 = vmatpush.msra.mxu0 %v210_v1  ;;  %1089 = vmatpush.msra.mxu1 %v210_v1  ;;  %v159_v6 = vld [vmem:[%s1569_s0 + $0x80] sm:$0xff]  ;;  %v160_v8 = vld [vmem:[%s1569_s0 + $0x88] sm:$0xff]  ;;  %v146_v11 = vld [vmem:[%s1569_s0 + $0x18] sm:$0xff] }
   0x5   :  { %1090 = vmatpush.msra.mxu2 %v210_v1  ;;  %1091 = vmatpush.msra.mxu3 %v210_v1  ;;  %v162_v12 = vld [vmem:[%s1569_s0 + $0x98] sm:$0xff]  ;;  %v175_v13 = vld [vmem:[%s1569_s0 + $0x100] sm:$0xff]  ;;  %v176_v16 = vld [vmem:[%s1569_s0 + $0x108] sm:$0xff] }
   0x6   :  { %422 = vmatpush.msra.mxu0 %v209_v2  ;;  %1092 = vmatpush.msra.mxu1 %v209_v2  ;;  %v147_v14 = vld [vmem:[%s1569_s0 + $0x20] sm:$0xff]  ;;  %v148_v17 = vld [vmem:[%s1569_s0 + $0x28] sm:$0xff]  ;;  %v177_v19 = vld [vmem:[%s1569_s0 + $0x110] sm:$0xff] }
   0x7   :  { %1093 = vmatpush.msra.mxu2 %v209_v2  ;;  %1094 = vmatpush.msra.mxu3 %v209_v2  ;;  %v163_v15 = vld [vmem:[%s1569_s0 + $0xa0] sm:$0xff]  ;;  %v164_v18 = vld [vmem:[%s1569_s0 + $0xa8] sm:$0xff]  ;;  %v149_v20 = vld [vmem:[%s1569_s0 + $0x30] sm:$0xff] }
   0x8   :  { %423 = vmatpush.msra.mxu0 %v208_v3  ;;  %1095 = vmatpush.msra.mxu1 %v208_v3  ;;  %v165_v21 = vld [vmem:[%s1569_s0 + $0xb0] sm:$0xff]  ;;  %v178_v22 = vld [vmem:[%s1569_s0 + $0x118] sm:$0xff]  ;;  %v179_v25 = vld [vmem:[%s1569_s0 + $0x120] sm:$0xff] }
   0x9   :  { %1096 = vmatpush.msra.mxu2 %v208_v3  ;;  %1097 = vmatpush.msra.mxu3 %v208_v3  ;;  %v150_v23 = vld [vmem:[%s1569_s0 + $0x38] sm:$0xff]  ;;  %v191_v26 = vld [vmem:[%s1569_s0 + $0x180] sm:$0xff]  ;;  %v180_v29 = vld [vmem:[%s1569_s0 + $0x128] sm:$0xff] }
   0xa   :  { %424 = vmatpush.msra.mxu0 %v207_v4  ;;  %1098 = vmatpush.msra.mxu1 %v207_v4  ;;  %v166_v24 = vld [vmem:[%s1569_s0 + $0xb8] sm:$0xff]  ;;  %v151_v27 = vld [vmem:[%s1569_s0 + $0x40] sm:$0xff]  ;;  %v192_v30 = vld [vmem:[%s1569_s0 + $0x188] sm:$0xff] }
   0xb   :  { %1022 = vmatmul.msk.f32.vlgmr.msra.gmra.mxu0 %vm212_vm1, %v143_v5  ;;  %1038 = vmatmul.msk.f32.vlgmr.msra.gmra.mxu1 %vm212_vm1, %v159_v6  ;;  %v167_v28 = vld [vmem:[%s1569_s0 + $0xc0] sm:$0xff]  ;;  %v152_v31 = vld [vmem:[%s1569_s0 + $0x48] sm:$0xff]  ;;  %v181_v33 = vld [vmem:[%s1569_s0 + $0x130] sm:$0xff] }
   0xc   :  { %1099 = vmatpush.msra.mxu2 %v207_v4  ;;  %1100 = vmatpush.msra.mxu3 %v207_v4  ;;  %v168_v32 = vld [vmem:[%s1569_s0 + $0xc8] sm:$0xff]  ;;  %v193_v34 = vld [vmem:[%s1569_s0 + $0x190] sm:$0xff]  ;;  %v182_v37 = vld [vmem:[%s1569_s0 + $0x138] sm:$0xff] }
   0xd   :  { %1054 = vmatmul.msk.f32.vlgmr.msra.gmra.mxu2 %vm212_vm1, %v175_v13  ;;  %1070 = vmatmul.msk.f32.vlgmr.msra.gmra.mxu3 %vm212_vm1, %v191_v26  ;;  %v153_v35 = vld [vmem:[%s1569_s0 + $0x50] sm:$0xff]  ;;  %v194_v38 = vld [vmem:[%s1569_s0 + $0x198] sm:$0xff]  ;;  %v183_v41 = vld [vmem:[%s1569_s0 + $0x140] sm:$0xff] }
   0xe   :  { %v169_v36 = vld [vmem:[%s1569_s0 + $0xd0] sm:$0xff]  ;;  %v154_v39 = vld [vmem:[%s1569_s0 + $0x58] sm:$0xff]  ;;  %v195_v42 = vld [vmem:[%s1569_s0 + $0x1a0] sm:$0xff] }
   0xf   :  { %v170_v40 = vld [vmem:[%s1569_s0 + $0xd8] sm:$0xff]  ;;  %v155_v43 = vld [vmem:[%s1569_s0 + $0x60] sm:$0xff]  ;;  %v184_v45 = vld [vmem:[%s1569_s0 + $0x148] sm:$0xff] }
  0x10   :  { %v171_v44 = vld [vmem:[%s1569_s0 + $0xe0] sm:$0xff]  ;;  %v196_v46 = vld [vmem:[%s1569_s0 + $0x1a8] sm:$0xff]  ;;  %v185_v49 = vld [vmem:[%s1569_s0 + $0x150] sm:$0xff] }
  0x11   :  { %v156_v47 = vld [vmem:[%s1569_s0 + $0x68] sm:$0xff]  ;;  %v197_v50 = vld [vmem:[%s1569_s0 + $0x1b0] sm:$0xff]  ;;  %v186_v53 = vld [vmem:[%s1569_s0 + $0x158] sm:$0xff] }
  0x12   :  { %v172_v48 = vld [vmem:[%s1569_s0 + $0xe8] sm:$0xff]  ;;  %v157_v51 = vld [vmem:[%s1569_s0 + $0x70] sm:$0xff]  ;;  %v198_v54 = vld [vmem:[%s1569_s0 + $0x1b8] sm:$0xff] }
  0x13   :  { %1023 = vmatmul.msk.f32.gmra.mxu0 %vm212_vm1, %v144_v7  ;;  %1039 = vmatmul.msk.f32.gmra.mxu1 %vm212_vm1, %v160_v8  ;;  %v173_v52 = vld [vmem:[%s1569_s0 + $0xf0] sm:$0xff]  ;;  %v158_v55 = vld [vmem:[%s1569_s0 + $0x78] sm:$0xff]  ;;  %v187_v57 = vld [vmem:[%s1569_s0 + $0x160] sm:$0xff] }
  0x14   :  { %v174_v56 = vld [vmem:[%s1569_s0 + $0xf8] sm:$0xff]  ;;  %v199_v58 = vld [vmem:[%s1569_s0 + $0x1c0] sm:$0xff]  ;;  %v188_v61 = vld [vmem:[%s1569_s0 + $0x168] sm:$0xff] }
  0x15   :  { %1055 = vmatmul.msk.f32.gmra.mxu2 %vm212_vm1, %v176_v16  ;;  %1071 = vmatmul.msk.f32.gmra.mxu3 %vm212_vm1, %v192_v30  ;;  %v200_v62 = vld [vmem:[%s1569_s0 + $0x1c8] sm:$0xff]  ;;  %v189_v5 = vld [vmem:[%s1569_s0 + $0x170] sm:$0xff]  ;;  %v202_v13 = vld [vmem:[%s1569_s0 + $0x1d8] sm:$0xff] }
  0x16   :  { %v201_v6 = vld [vmem:[%s1569_s0 + $0x1d0] sm:$0xff] }
  0x1b   :  { %1024 = vmatmul.msk.f32.gmra.mxu0 %vm212_vm1, %v145_v9  ;;  %1040 = vmatmul.msk.f32.gmra.mxu1 %vm212_vm1, %v161_v10 }
  0x1d   :  { %1056 = vmatmul.msk.f32.gmra.mxu2 %vm212_vm1, %v177_v19  ;;  %1072 = vmatmul.msk.f32.gmra.mxu3 %vm212_vm1, %v193_v34 }
  0x23   :  { %1025 = vmatmul.msk.f32.gmra.mxu0 %vm212_vm1, %v146_v11  ;;  %1041 = vmatmul.msk.f32.gmra.mxu1 %vm212_vm1, %v162_v12  ;;  %v190_v12 = vld [vmem:[%s1569_s0 + $0x178] sm:$0xff] }
  0x25   :  { %1057 = vmatmul.msk.f32.gmra.mxu2 %vm212_vm1, %v178_v22  ;;  %1073 = vmatmul.msk.f32.gmra.mxu3 %vm212_vm1, %v194_v38 }
  0x2b   :  { %1026 = vmatmul.msk.f32.gmra.mxu0 %vm212_vm1, %v147_v14  ;;  %1042 = vmatmul.msk.f32.gmra.mxu1 %vm212_vm1, %v163_v15 }
  0x2d   :  { %1058 = vmatmul.msk.f32.gmra.mxu2 %vm212_vm1, %v179_v25  ;;  %1074 = vmatmul.msk.f32.gmra.mxu3 %vm212_vm1, %v195_v42  ;;  %v204_v25 = vld [vmem:[%s1569_s0 + $0x1e8] sm:$0xff] }
  0x33   :  { %1027 = vmatmul.msk.f32.gmra.mxu0 %vm212_vm1, %v148_v17  ;;  %1043 = vmatmul.msk.f32.gmra.mxu1 %vm212_vm1, %v164_v18  ;;  %v203_v18 = vld [vmem:[%s1569_s0 + $0x1e0] sm:$0xff] }
  0x35   :  { %1059 = vmatmul.msk.f32.gmra.mxu2 %vm212_vm1, %v180_v29  ;;  %1075 = vmatmul.msk.f32.gmra.mxu3 %vm212_vm1, %v196_v46  ;;  %v205_v29 = vld [vmem:[%s1569_s0 + $0x1f0] sm:$0xff] }
  0x3b   :  { %1028 = vmatmul.msk.f32.gmra.mxu0 %vm212_vm1, %v149_v20  ;;  %1044 = vmatmul.msk.f32.gmra.mxu1 %vm212_vm1, %v165_v21 }
  0x3d   :  { %1060 = vmatmul.msk.f32.gmra.mxu2 %vm212_vm1, %v181_v33  ;;  %1076 = vmatmul.msk.f32.gmra.mxu3 %vm212_vm1, %v197_v50  ;;  %v206_v33 = vld [vmem:[%s1569_s0 + $0x1f8] sm:$0xff] }
  0x43   :  { %1029 = vmatmul.msk.f32.gmra.mxu0 %vm212_vm1, %v150_v23  ;;  %1045 = vmatmul.msk.f32.gmra.mxu1 %vm212_vm1, %v166_v24 }
  0x45   :  { %1061 = vmatmul.msk.f32.gmra.mxu2 %vm212_vm1, %v182_v37  ;;  %1077 = vmatmul.msk.f32.gmra.mxu3 %vm212_vm1, %v198_v54 }
  0x4b   :  { %1030 = vmatmul.msk.f32.gmra.mxu0 %vm212_vm1, %v151_v27  ;;  %1046 = vmatmul.msk.f32.gmra.mxu1 %vm212_vm1, %v167_v28 }
  0x4d   :  { %1062 = vmatmul.msk.f32.gmra.mxu2 %vm212_vm1, %v183_v41  ;;  %1078 = vmatmul.msk.f32.gmra.mxu3 %vm212_vm1, %v199_v58 }
  0x53   :  { %1031 = vmatmul.msk.f32.gmra.mxu0 %vm212_vm1, %v152_v31  ;;  %1047 = vmatmul.msk.f32.gmra.mxu1 %vm212_vm1, %v168_v32 }
  0x55   :  { %1063 = vmatmul.msk.f32.gmra.mxu2 %vm212_vm1, %v184_v45  ;;  %1079 = vmatmul.msk.f32.gmra.mxu3 %vm212_vm1, %v200_v62 }
  0x5b   :  { %1032 = vmatmul.msk.f32.gmra.mxu0 %vm212_vm1, %v153_v35  ;;  %1048 = vmatmul.msk.f32.gmra.mxu1 %vm212_vm1, %v169_v36 }
  0x5d   :  { %1064 = vmatmul.msk.f32.gmra.mxu2 %vm212_vm1, %v185_v49  ;;  %1080 = vmatmul.msk.f32.gmra.mxu3 %vm212_vm1, %v201_v6 }
  0x63   :  { %1033 = vmatmul.msk.f32.gmra.mxu0 %vm212_vm1, %v154_v39  ;;  %1049 = vmatmul.msk.f32.gmra.mxu1 %vm212_vm1, %v170_v40 }
  0x65   :  { %1065 = vmatmul.msk.f32.gmra.mxu2 %vm212_vm1, %v186_v53  ;;  %1081 = vmatmul.msk.f32.gmra.mxu3 %vm212_vm1, %v202_v13 }
  0x6b   :  { %1034 = vmatmul.msk.f32.gmra.mxu0 %vm212_vm1, %v155_v43  ;;  %1050 = vmatmul.msk.f32.gmra.mxu1 %vm212_vm1, %v171_v44 }
  0x6d   :  { %1066 = vmatmul.msk.f32.gmra.mxu2 %vm212_vm1, %v187_v57  ;;  %1082 = vmatmul.msk.f32.gmra.mxu3 %vm212_vm1, %v203_v18 }
  0x73   :  { %1035 = vmatmul.msk.f32.gmra.mxu0 %vm212_vm1, %v156_v47  ;;  %1051 = vmatmul.msk.f32.gmra.mxu1 %vm212_vm1, %v172_v48 }
  0x75   :  { %1067 = vmatmul.msk.f32.gmra.mxu2 %vm212_vm1, %v188_v61  ;;  %1083 = vmatmul.msk.f32.gmra.mxu3 %vm212_vm1, %v204_v25 }
  0x7b   :  { %1036 = vmatmul.msk.f32.gmra.mxu0 %vm212_vm1, %v157_v51  ;;  %1052 = vmatmul.msk.f32.gmra.mxu1 %vm212_vm1, %v173_v52 }
  0x7d   :  { %1068 = vmatmul.msk.f32.gmra.mxu2 %vm212_vm1, %v189_v5  ;;  %1084 = vmatmul.msk.f32.gmra.mxu3 %vm212_vm1, %v205_v29 }
  0x83   :  { %1037 = vmatmul.msk.f32.gmra.mxu0 %vm212_vm1, %v158_v55  ;;  %1053 = vmatmul.msk.f32.gmra.mxu1 %vm212_vm1, %v174_v56 }
  0x85   :  { %1069 = vmatmul.msk.f32.gmra.mxu2 %vm212_vm1, %v190_v12  ;;  %1085 = vmatmul.msk.f32.gmra.mxu3 %vm212_vm1, %v206_v33 }
  0x88   :  { %v426_v59 = vpop.f32.mrf.mxu0  ;;  %v1347_v60 = vpop.f32.mrf.mxu1 }
  0x89   :  { %v882_v1 = vmul.f32 %v426_v59, %v426_v59 }
  0x90   :  { %v429_v63 = vpop.f32.mrf.mxu0  ;;  %v1357_v0 = vpop.f32.mrf.mxu1 }
  0x91   :  { %v813_v2 = vadd.f32 %v429_v63, %v426_v59  ;;  %v883_v3 = vmul.f32 %v429_v63, %v429_v63  ;;  %v1383_v23 = vpop.f32.mrf.mxu2  ;;  %v1409_v38 = vpop.f32.mrf.mxu3 }
  0x93   :  { %v946_v4 = vadd.f32 %v883_v3, %v882_v1 }
  0x98   :  { %v432_v7 = vpop.f32.mrf.mxu0  ;;  %v1367_v10 = vpop.f32.mrf.mxu1 }
  0x99   :  { %v814_v8 = vadd.f32 %v813_v2, %v432_v7  ;;  %v884_v9 = vmul.f32 %v432_v7, %v432_v7  ;;  %v1391_v28 = vpop.f32.mrf.mxu2  ;;  %v1415_v42 = vpop.f32.mrf.mxu3 }
  0x9b   :  { %v947_v11 = vadd.f32 %v946_v4, %v884_v9 }
  0xa0   :  { %v435_v14 = vpop.f32.mrf.mxu0  ;;  %v1380_v19 = vpop.f32.mrf.mxu1 }
  0xa1   :  { %v815_v15 = vadd.f32 %v814_v8, %v435_v14  ;;  %v885_v16 = vmul.f32 %v435_v14, %v435_v14  ;;  %v1399_v32 = vpop.f32.mrf.mxu2  ;;  %v1421_v46 = vpop.f32.mrf.mxu3 }
  0xa3   :  { %v948_v17 = vadd.f32 %v947_v11, %v885_v16 }
  0xa8   :  { %v438_v20 = vpop.f32.mrf.mxu0  ;;  %v1389_v26 = vpop.f32.mrf.mxu1 }
  0xa9   :  { %v816_v21 = vadd.f32 %v815_v15, %v438_v20  ;;  %v886_v22 = vmul.f32 %v438_v20, %v438_v20  ;;  %v1407_v36 = vpop.f32.mrf.mxu2  ;;  %v1427_v50 = vpop.f32.mrf.mxu3 }
  0xab   :  { %v949_v24 = vadd.f32 %v948_v17, %v886_v22 }
  0xb0   :  { %v441_v27 = vpop.f32.mrf.mxu0  ;;  %v1397_v31 = vpop.f32.mrf.mxu1 }
  0xb1   :  { %v1413_v40 = vpop.f32.mrf.mxu2  ;;  %v887_v53 = vmul.f32 %v441_v27, %v441_v27  ;;  %v817_v55 = vadd.f32 %v816_v21, %v441_v27  ;;  %v1433_v57 = vpop.f32.mrf.mxu3 }
  0xb3   :  { %v950_v58 = vadd.f32 %v949_v24, %v887_v53 }
  0xb8   :  { %v444_v30 = vpop.f32.mrf.mxu0  ;;  %v1405_v35 = vpop.f32.mrf.mxu1 }
  0xb9   :  { %v1419_v45 = vpop.f32.mrf.mxu2  ;;  %v888_v56 = vmul.f32 %v444_v30, %v444_v30  ;;  %v818_v59 = vadd.f32 %v817_v55, %v444_v30  ;;  %v1439_v16 = vpop.f32.mrf.mxu3 }
  0xbb   :  { %v951_v63 = vadd.f32 %v950_v58, %v888_v56 }
  0xc0   :  { %v447_v34 = vpop.f32.mrf.mxu0  ;;  %v1411_v39 = vpop.f32.mrf.mxu1 }
  0xc1   :  { %v1425_v49 = vpop.f32.mrf.mxu2  ;;  %v889_v61 = vmul.f32 %v447_v34, %v447_v34  ;;  %v819_v1 = vadd.f32 %v818_v59, %v447_v34  ;;  %v1443_v56 = vpop.f32.mrf.mxu3  ;;  %v899_v59 = vmul.f32 %v1357_v0, %v1357_v0 }
  0xc3   :  { %v952_v3 = vadd.f32 %v951_v63, %v889_v61  ;;  %v900_v63 = vmul.f32 %v1367_v10, %v1367_v10 }
  0xc8   :  { %v450_v37 = vpop.f32.mrf.mxu0  ;;  %v1417_v43 = vpop.f32.mrf.mxu1 }
  0xc9   :  { %v1431_v54 = vpop.f32.mrf.mxu2  ;;  %v890_v2 = vmul.f32 %v450_v37, %v450_v37  ;;  %v820_v4 = vadd.f32 %v819_v1, %v450_v37 }
  0xcb   :  { %v953_v7 = vadd.f32 %v952_v3, %v890_v2 }
  0xd0   :  { %v453_v41 = vpop.f32.mrf.mxu0  ;;  %v1423_v48 = vpop.f32.mrf.mxu1 }
  0xd1   :  { %v891_v5 = vmul.f32 %v453_v41, %v453_v41  ;;  %v821_v8 = vadd.f32 %v820_v4, %v453_v41  ;;  %v1437_v11 = vpop.f32.mrf.mxu2  ;;  %v901_v4 = vmul.f32 %v1380_v19, %v1380_v19 }
  0xd3   :  { %v954_v12 = vadd.f32 %v953_v7, %v891_v5 }
  0xd8   :  { %v456_v44 = vpop.f32.mrf.mxu0  ;;  %v1429_v52 = vpop.f32.mrf.mxu1 }
  0xd9   :  { %v892_v9 = vmul.f32 %v456_v44, %v456_v44  ;;  %v822_v13 = vadd.f32 %v821_v8, %v456_v44  ;;  %v1441_v41 = vpop.f32.mrf.mxu2  ;;  %v902_v8 = vmul.f32 %v1389_v26, %v1389_v26 }
  0xdb   :  { %v955_v17 = vadd.f32 %v954_v12, %v892_v9  ;;  %v1462_v12 = vpop.f32.mrf.mxu3 }
  0xe0   :  { %v459_v47 = vpop.f32.mrf.mxu0  ;;  %v1435_v6 = vpop.f32.mrf.mxu1 }
  0xe1   :  { %v893_v14 = vmul.f32 %v459_v47, %v459_v47  ;;  %v823_v18 = vadd.f32 %v822_v13, %v459_v47  ;;  %v898_v47 = vmul.f32 %v1347_v60, %v1347_v60  ;;  %v1457_v7 = vpop.f32.mrf.mxu2 }
  0xe3   :  { %v956_v21 = vadd.f32 %v955_v17, %v893_v14 }
  0xe8   :  { %v462_v51 = vpop.f32.mrf.mxu0  ;;  %v510_v30 = vpop.f32.mrf.mxu1 }
  0xe9   :  { %v894_v20 = vmul.f32 %v462_v51, %v462_v51  ;;  %v824_v22 = vadd.f32 %v823_v18, %v462_v51  ;;  %v905_v18 = vmul.f32 %v1411_v39, %v1411_v39 }
  0xeb   :  { %v957_v25 = vadd.f32 %v956_v21, %v894_v20 }
  0xf0   :  { %v465_v62 = vpop.f32.mrf.mxu0  ;;  %v513_v3 = vpop.f32.mrf.mxu1 }
  0xf1   :  { %v895_v24 = vmul.f32 %v465_v62, %v465_v62  ;;  %v825_v27 = vadd.f32 %v824_v22, %v465_v62  ;;  %v906_v22 = vmul.f32 %v1417_v43, %v1417_v43 }
  0xf3   :  { %v958_v33 = vadd.f32 %v957_v25, %v895_v24  ;;  %v1476_v25 = vpop.f32.mrf.mxu2 }
  0xf8   :  { %v468_v15 = vpop.f32.mrf.mxu0  ;;  %v516_v21 = vpop.f32.mrf.mxu1 }
  0xf9   :  { %v896_v29 = vmul.f32 %v468_v15, %v468_v15  ;;  %v826_v34 = vadd.f32 %v825_v27, %v468_v15  ;;  %v907_v27 = vmul.f32 %v1423_v48, %v1423_v48 }
  0xfb   :  { %v959_v44 = vadd.f32 %v958_v33, %v896_v29  ;;  %v1481_v33 = vpop.f32.mrf.mxu3 }
 0x100   :  { %v471_v37 = vpop.f32.mrf.mxu0 }
 0x101   :  { %v827_v53 = vadd.f32 %v826_v34, %v471_v37  ;;  %v897_v55 = vmul.f32 %v471_v37, %v471_v37 }
 0x103   :  { %v828_v51 = vadd.f32 %v827_v53, %v1347_v60  ;;  %v960_v58 = vadd.f32 %v959_v44, %v897_v55 }
 0x105   :  { %v829_v61 = vadd.f32 %v828_v51, %v1357_v0  ;;  %v961_v62 = vadd.f32 %v960_v58, %v898_v47  ;;  %v910_v51 = vmul.f32 %v510_v30, %v510_v30  ;;  %v519_v58 = vpop.f32.mrf.mxu1 }
 0x107   :  { %v830_v1 = vadd.f32 %v829_v61, %v1367_v10  ;;  %v962_v2 = vadd.f32 %v961_v62, %v899_v59  ;;  %v903_v10 = vmul.f32 %v1397_v31, %v1397_v31  ;;  %v911_v61 = vmul.f32 %v513_v3, %v513_v3  ;;  %v558_v62 = vpop.f32.mrf.mxu2 }
 0x109   :  { %v831_v5 = vadd.f32 %v830_v1, %v1380_v19  ;;  %v963_v60 = vadd.f32 %v962_v2, %v900_v63  ;;  %v904_v19 = vmul.f32 %v1405_v35, %v1405_v35  ;;  %v912_v2 = vmul.f32 %v516_v21, %v516_v21 }
 0x10b   :  { %v832_v0 = vadd.f32 %v831_v5, %v1389_v26  ;;  %v964_v9 = vadd.f32 %v963_v60, %v901_v4  ;;  %v913_v4 = vmul.f32 %v519_v58, %v519_v58 }
 0x10d   :  { %v833_v13 = vadd.f32 %v832_v0, %v1397_v31  ;;  %v965_v14 = vadd.f32 %v964_v9, %v902_v8 }
 0x10f   :  { %v966_v15 = vadd.f32 %v965_v14, %v903_v10  ;;  %v834_v17 = vadd.f32 %v833_v13, %v1405_v35  ;;  %v916_v10 = vmul.f32 %v1399_v32, %v1399_v32 }
 0x111   :  { %v835_v26 = vadd.f32 %v834_v17, %v1411_v39  ;;  %v967_v20 = vadd.f32 %v966_v15, %v904_v19  ;;  %v908_v39 = vmul.f32 %v1429_v52, %v1429_v52  ;;  %v561_v19 = vpop.f32.mrf.mxu2  ;;  %v917_v15 = vmul.f32 %v1407_v36, %v1407_v36 }
 0x113   :  { %v836_v24 = vadd.f32 %v835_v26, %v1417_v43  ;;  %v968_v31 = vadd.f32 %v967_v20, %v905_v18  ;;  %v909_v43 = vmul.f32 %v1435_v6, %v1435_v6  ;;  %v918_v26 = vmul.f32 %v1413_v40, %v1413_v40 }
 0x115   :  { %v837_v35 = vadd.f32 %v836_v24, %v1423_v48  ;;  %v969_v29 = vadd.f32 %v968_v31, %v906_v22  ;;  %v920_v24 = vmul.f32 %v1425_v49, %v1425_v49 }
 0x117   :  { %v838_v34 = vadd.f32 %v837_v35, %v1429_v52  ;;  %v970_v37 = vadd.f32 %v969_v29, %v907_v27  ;;  %v1489_v52 = vpop.f32.mrf.mxu3  ;;  %v921_v27 = vmul.f32 %v1431_v54, %v1431_v54 }
 0x119   :  { %v839_v44 = vadd.f32 %v838_v34, %v1435_v6  ;;  %v971_v53 = vadd.f32 %v970_v37, %v908_v39  ;;  %v914_v6 = vmul.f32 %v1383_v23, %v1383_v23  ;;  %v922_v39 = vmul.f32 %v1437_v11, %v1437_v11 }
 0x11b   :  { %v972_v55 = vadd.f32 %v971_v53, %v909_v43  ;;  %v840_v47 = vadd.f32 %v839_v44, %v510_v30  ;;  %v915_v30 = vmul.f32 %v1391_v28, %v1391_v28  ;;  %v923_v44 = vmul.f32 %v1441_v41, %v1441_v41 }
 0x11c   :  { %v924_v53 = vmul.f32 %v1457_v7, %v1457_v7 }
 0x11d   :  { %v973_v48 = vadd.f32 %v972_v55, %v910_v51  ;;  %v841_v59 = vadd.f32 %v840_v47, %v513_v3  ;;  %v925_v51 = vmul.f32 %v1476_v25, %v1476_v25 }
 0x11f   :  { %v974_v63 = vadd.f32 %v973_v48, %v911_v61  ;;  %v842_v1 = vadd.f32 %v841_v59, %v516_v21  ;;  %v1503_v18 = vpop.f32.mrf.mxu3  ;;  %v919_v21 = vmul.f32 %v1419_v45, %v1419_v45  ;;  %v926_v59 = vmul.f32 %v558_v62, %v558_v62 }
 0x121   :  { %v975_v5 = vadd.f32 %v974_v63, %v912_v2  ;;  %v843_v60 = vadd.f32 %v842_v1, %v519_v58 }
 0x123   :  { %v844_v8 = vadd.f32 %v843_v60, %v1383_v23  ;;  %v976_v0 = vadd.f32 %v975_v5, %v913_v4 }
 0x125   :  { %v845_v3 = vadd.f32 %v844_v8, %v1391_v28  ;;  %v977_v9 = vadd.f32 %v976_v0, %v914_v6  ;;  %v930_v0 = vmul.f32 %v1409_v38, %v1409_v38 }
 0x127   :  { %v846_v13 = vadd.f32 %v845_v3, %v1399_v32  ;;  %v978_v14 = vadd.f32 %v977_v9, %v915_v30  ;;  %v603_v37 = vpop.f32.mrf.mxu3 }
 0x129   :  { %v847_v17 = vadd.f32 %v846_v13, %v1407_v36  ;;  %v979_v23 = vadd.f32 %v978_v14, %v916_v10  ;;  %v932_v10 = vmul.f32 %v1421_v46, %v1421_v46 }
 0x12b   :  { %v848_v28 = vadd.f32 %v847_v17, %v1413_v40  ;;  %v980_v20 = vadd.f32 %v979_v23, %v917_v15  ;;  %v564_v40 = vpop.f32.mrf.mxu2  ;;  %v933_v15 = vmul.f32 %v1427_v50, %v1427_v50  ;;  %v934_v23 = vmul.f32 %v1433_v57, %v1433_v57 }
 0x12c   :  { %v928_v60 = vmul.f32 %v564_v40, %v564_v40 }
 0x12d   :  { %v849_v32 = vadd.f32 %v848_v28, %v1419_v45  ;;  %v981_v22 = vadd.f32 %v980_v20, %v918_v26  ;;  %v935_v28 = vmul.f32 %v1439_v16, %v1439_v16 }
 0x12f   :  { %v982_v31 = vadd.f32 %v981_v22, %v919_v21  ;;  %v850_v36 = vadd.f32 %v849_v32, %v1425_v49  ;;  %v606_v2 = vpop.f32.mrf.mxu3  ;;  %v936_v21 = vmul.f32 %v1443_v56, %v1443_v56 }
 0x131   :  { %v851_v35 = vadd.f32 %v850_v36, %v1431_v54  ;;  %v983_v29 = vadd.f32 %v982_v31, %v920_v24  ;;  %v938_v36 = vmul.f32 %v1481_v33, %v1481_v33 }
 0x133   :  { %v852_v34 = vadd.f32 %v851_v35, %v1437_v11  ;;  %v984_v45 = vadd.f32 %v983_v29, %v921_v27  ;;  %v567_v61 = vpop.f32.mrf.mxu2  ;;  %v939_v35 = vmul.f32 %v1489_v52, %v1489_v52 }
 0x134   :  { %v929_v6 = vmul.f32 %v567_v61, %v567_v61 }
 0x135   :  { %v853_v43 = vadd.f32 %v852_v34, %v1441_v41  ;;  %v985_v49 = vadd.f32 %v984_v45, %v922_v39  ;;  %v927_v41 = vmul.f32 %v561_v19, %v561_v19  ;;  %v941_v45 = vmul.f32 %v603_v37, %v603_v37 }
 0x137   :  { %v854_v54 = vadd.f32 %v853_v43, %v1457_v7  ;;  %v986_v55 = vadd.f32 %v985_v49, %v923_v44 }
 0x139   :  { %v855_v47 = vadd.f32 %v854_v54, %v1476_v25  ;;  %v987_v11 = vadd.f32 %v986_v55, %v924_v53  ;;  %v942_v53 = vmul.f32 %v606_v2, %v606_v2 }
 0x13b   :  { %v988_v58 = vadd.f32 %v987_v11, %v925_v51  ;;  %v856_v48 = vadd.f32 %v855_v47, %v558_v62  ;;  %v931_v62 = vmul.f32 %v1415_v42, %v1415_v42 }
 0x13d   :  { %v989_v63 = vadd.f32 %v988_v58, %v926_v59  ;;  %v857_v1 = vadd.f32 %v856_v48, %v561_v19  ;;  %v609_v19 = vpop.f32.mrf.mxu3 }
 0x13e   :  { %v943_v47 = vmul.f32 %v609_v19, %v609_v19 }
 0x13f   :  { %v990_v4 = vadd.f32 %v989_v63, %v927_v41  ;;  %v858_v5 = vadd.f32 %v857_v1, %v564_v40 }
 0x141   :  { %v991_v7 = vadd.f32 %v990_v4, %v928_v60  ;;  %v859_v8 = vadd.f32 %v858_v5, %v567_v61 }
 0x143   :  { %v860_v25 = vadd.f32 %v859_v8, %v1409_v38  ;;  %v992_v30 = vadd.f32 %v991_v7, %v929_v6 }
 0x145   :  { %v861_v3 = vadd.f32 %v860_v25, %v1415_v42  ;;  %v993_v9 = vadd.f32 %v992_v30, %v930_v0 }
 0x147   :  { %v862_v13 = vadd.f32 %v861_v3, %v1421_v46  ;;  %v994_v14 = vadd.f32 %v993_v9, %v931_v62 }
 0x149   :  { %v863_v17 = vadd.f32 %v862_v13, %v1427_v50  ;;  %v995_v38 = vadd.f32 %v994_v14, %v932_v10  ;;  %v937_v50 = vmul.f32 %v1462_v12, %v1462_v12 }
 0x14b   :  { %v864_v26 = vadd.f32 %v863_v17, %v1433_v57  ;;  %v996_v42 = vadd.f32 %v995_v38, %v933_v15  ;;  %v612_v57 = vpop.f32.mrf.mxu3 }
 0x14d   :  { %v865_v20 = vadd.f32 %v864_v26, %v1439_v16  ;;  %v997_v46 = vadd.f32 %v996_v42, %v934_v23 }
 0x14f   :  { %v998_v32 = vadd.f32 %v997_v46, %v935_v28  ;;  %v866_v22 = vadd.f32 %v865_v20, %v1443_v56  ;;  %v940_v56 = vmul.f32 %v1503_v18, %v1503_v18 }
 0x151   :  { %v867_v24 = vadd.f32 %v866_v22, %v1462_v12  ;;  %v999_v31 = vadd.f32 %v998_v32, %v936_v21 }
 0x153   :  { %v868_v27 = vadd.f32 %v867_v24, %v1481_v33  ;;  %v1000_v16 = vadd.f32 %v999_v31, %v937_v50  ;;  %v615_v33 = vpop.f32.mrf.mxu3 }
 0x154   :  { %v945_v58 = vmul.f32 %v615_v33, %v615_v33 }
 0x155   :  { %v869_v29 = vadd.f32 %v868_v27, %v1489_v52  ;;  %v1001_v40 = vadd.f32 %v1000_v16, %v938_v36  ;;  %v944_v52 = vmul.f32 %v612_v57, %v612_v57 }
 0x157   :  { %v870_v39 = vadd.f32 %v869_v29, %v1503_v18  ;;  %v1002_v12 = vadd.f32 %v1001_v40, %v939_v35 }
 0x159   :  { %v871_v34 = vadd.f32 %v870_v39, %v603_v37  ;;  %v1003_v44 = vadd.f32 %v1002_v12, %v940_v56 }
 0x15b   :  { %v1004_v43 = vadd.f32 %v1003_v44, %v941_v45  ;;  %v872_v49 = vadd.f32 %v871_v34, %v606_v2 }
 0x15d   :  { %v1005_v54 = vadd.f32 %v1004_v43, %v942_v53  ;;  %v873_v55 = vadd.f32 %v872_v49, %v609_v19 }
 0x15f   :  { %v1006_v51 = vadd.f32 %v1005_v54, %v943_v47  ;;  %v874_v11 = vadd.f32 %v873_v55, %v612_v57 }
 0x161   :  { %v1007_v48 = vadd.f32 %v1006_v51, %v944_v52  ;;  %v875_v59 = vadd.f32 %v874_v11, %v615_v33 }
 0x163   :  { %v876_v61 = vrot.slane %v875_v59, 4  ;;  %v1008_v63 = vadd.f32 %v1007_v48, %v945_v58 }
 0x165   :  { %v877_v18 = vadd.f32 %v876_v61, %v875_v59  ;;  %v1009_v1 = vrot.slane %v1008_v63, 4 }
 0x167   :  { %v878_v41 = vrot.slane %v877_v18, 2  ;;  %v1010_v37 = vadd.f32 %v1009_v1, %v1008_v63 }
 0x169   :  { %v879_v4 = vadd.f32 %v878_v41, %v877_v18  ;;  %v1011_v5 = vrot.slane %v1010_v37, 2 }
 0x16b   :  { %v880_v60 = vrot.slane %v879_v4, 1  ;;  %v1012_v2 = vadd.f32 %v1011_v5, %v1010_v37 }
 0x16d   :  { %v881_v6 = vadd.f32 %v880_v60, %v879_v4  ;;  %v1013_v7 = vrot.slane %v1012_v2, 1 }
 0x16f   :  { %v1014_v8 = vadd.f32 %v1013_v7, %v1012_v2  ;;  %1015 = vst [vmem:[%s1570_s2] sm:$0x1] %v881_v6 }
 0x171   :  { %1016 = vst [vmem:[%s1570_s2 + $0x1] sm:$0x1] %v1014_v8 }

// kernel: conv_batch_relu.3
= control target key start
LH: loop header
LB: loop body
LE: loop exit
PB: predicated region body
PF: predicated region fallthrough
CT: control target
= control target key end

     0   :  { %vm408_vm0 = vcmask 1043456   ;;  %vm215_vm1 = vcmask 293888   ;;  %vm1034_vm5 = vcmask 64512   ;;  %s1873_s1 = inlined_call_operand.vmem [shape: f32[36,128], index: 1, kind: input, shape index: {}]   ;;  %s1874_s0 = inlined_call_operand.vmem [shape: f32[512,36], index: 0, kind: input, shape index: {}]   ;;  %s1875_s2 = inlined_call_operand.vmem [shape: f32[1,2,128], index: 2, kind: input, shape index: {}]   ;;  %s1876_s3 = inlined_call_operand.vmem [shape: f32[512,8], index: 3, kind: output, shape index: {}]  }
   0x1   :  { %v214_v0 = vld [vmem:[%s1873_s1 + $0x20] sm:$0xf]  ;;  %v213_v1 = vld [vmem:[%s1873_s1 + $0x18] sm:$0xff]  ;;  %v212_v2 = vld [vmem:[%s1873_s1 + $0x10] sm:$0xff] }
   0x2   :  { %1169 = vmatpush.msk.msra.mxu2 %vm408_vm0, %v214_v0  ;;  %1170 = vmatpush.msk.msra.mxu3 %vm408_vm0, %v214_v0  ;;  %v211_v3 = vld [vmem:[%s1873_s1 + $0x8] sm:$0xff]  ;;  %v210_v4 = vld [vmem:[%s1873_s1] sm:$0xff]  ;;  %v180_v13 = vld [vmem:[%s1874_s0 + $0x110] sm:$0xff] }
   0x3   :  { %1103 = vmatpush.msk.msra.mxu0 %vm408_vm0, %v214_v0  ;;  %1168 = vmatpush.msk.msra.mxu1 %vm408_vm0, %v214_v0  ;;  %v178_v5 = vld [vmem:[%s1874_s0 + $0x100] sm:$0xff]  ;;  %v179_v9 = vld [vmem:[%s1874_s0 + $0x108] sm:$0xff]  ;;  %v196_v14 = vld [vmem:[%s1874_s0 + $0x190] sm:$0xff] }
   0x4   :  { %1172 = vmatpush.msra.mxu2 %v213_v1  ;;  %1173 = vmatpush.msra.mxu3 %v213_v1  ;;  %v194_v6 = vld [vmem:[%s1874_s0 + $0x180] sm:$0xff]  ;;  %v195_v10 = vld [vmem:[%s1874_s0 + $0x188] sm:$0xff]  ;;  %v148_v15 = vld [vmem:[%s1874_s0 + $0x10] sm:$0xff] }
   0x5   :  { %424 = vmatpush.msra.mxu0 %v213_v1  ;;  %1171 = vmatpush.msra.mxu1 %v213_v1  ;;  %v146_v7 = vld [vmem:[%s1874_s0] sm:$0xff]  ;;  %v147_v11 = vld [vmem:[%s1874_s0 + $0x8] sm:$0xff]  ;;  %v164_v16 = vld [vmem:[%s1874_s0 + $0x90] sm:$0xff] }
   0x6   :  { %1175 = vmatpush.msra.mxu2 %v212_v2  ;;  %1176 = vmatpush.msra.mxu3 %v212_v2  ;;  %v162_v8 = vld [vmem:[%s1874_s0 + $0x80] sm:$0xff]  ;;  %v163_v12 = vld [vmem:[%s1874_s0 + $0x88] sm:$0xff]  ;;  %v181_v17 = vld [vmem:[%s1874_s0 + $0x118] sm:$0xff] }
   0x7   :  { %425 = vmatpush.msra.mxu0 %v212_v2  ;;  %1174 = vmatpush.msra.mxu1 %v212_v2  ;;  %v197_v18 = vld [vmem:[%s1874_s0 + $0x198] sm:$0xff]  ;;  %v182_v21 = vld [vmem:[%s1874_s0 + $0x120] sm:$0xff]  ;;  %v183_v25 = vld [vmem:[%s1874_s0 + $0x128] sm:$0xff] }
   0x8   :  { %1178 = vmatpush.msra.mxu2 %v211_v3  ;;  %1179 = vmatpush.msra.mxu3 %v211_v3  ;;  %v149_v19 = vld [vmem:[%s1874_s0 + $0x18] sm:$0xff]  ;;  %v198_v22 = vld [vmem:[%s1874_s0 + $0x1a0] sm:$0xff]  ;;  %v199_v26 = vld [vmem:[%s1874_s0 + $0x1a8] sm:$0xff] }
   0x9   :  { %426 = vmatpush.msra.mxu0 %v211_v3  ;;  %1177 = vmatpush.msra.mxu1 %v211_v3  ;;  %v165_v20 = vld [vmem:[%s1874_s0 + $0x98] sm:$0xff]  ;;  %v150_v23 = vld [vmem:[%s1874_s0 + $0x20] sm:$0xff]  ;;  %v151_v27 = vld [vmem:[%s1874_s0 + $0x28] sm:$0xff] }
   0xa   :  { %1181 = vmatpush.msra.mxu2 %v210_v4  ;;  %1182 = vmatpush.msra.mxu3 %v210_v4  ;;  %v166_v24 = vld [vmem:[%s1874_s0 + $0xa0] sm:$0xff]  ;;  %v167_v28 = vld [vmem:[%s1874_s0 + $0xa8] sm:$0xff]  ;;  %v184_v29 = vld [vmem:[%s1874_s0 + $0x130] sm:$0xff] }
   0xb   :  { %1136 = vmatmul.msk.f32.vlgmr.msra.gmra.mxu2 %vm215_vm1, %v178_v5  ;;  %1152 = vmatmul.msk.f32.vlgmr.msra.gmra.mxu3 %vm215_vm1, %v194_v6  ;;  %v200_v30 = vld [vmem:[%s1874_s0 + $0x1b0] sm:$0xff]  ;;  %v185_v33 = vld [vmem:[%s1874_s0 + $0x138] sm:$0xff]  ;;  %v186_v37 = vld [vmem:[%s1874_s0 + $0x140] sm:$0xff] }
   0xc   :  { %427 = vmatpush.msra.mxu0 %v210_v4  ;;  %1180 = vmatpush.msra.mxu1 %v210_v4  ;;  %v152_v31 = vld [vmem:[%s1874_s0 + $0x30] sm:$0xff]  ;;  %v201_v34 = vld [vmem:[%s1874_s0 + $0x1b8] sm:$0xff]  ;;  %v202_v38 = vld [vmem:[%s1874_s0 + $0x1c0] sm:$0xff] }
   0xd   :  { %1104 = vmatmul.msk.f32.vlgmr.msra.gmra.mxu0 %vm215_vm1, %v146_v7  ;;  %1120 = vmatmul.msk.f32.vlgmr.msra.gmra.mxu1 %vm215_vm1, %v162_v8  ;;  %v168_v32 = vld [vmem:[%s1874_s0 + $0xb0] sm:$0xff]  ;;  %v153_v35 = vld [vmem:[%s1874_s0 + $0x38] sm:$0xff]  ;;  %v154_v39 = vld [vmem:[%s1874_s0 + $0x40] sm:$0xff] }
   0xe   :  { %v169_v36 = vld [vmem:[%s1874_s0 + $0xb8] sm:$0xff]  ;;  %v170_v40 = vld [vmem:[%s1874_s0 + $0xc0] sm:$0xff]  ;;  %v187_v44 = vld [vmem:[%s1874_s0 + $0x148] sm:$0xff] }
   0xf   :  { %v752_v41 = vld [vmem:[%s1875_s2] sm:$0x3]  ;;  %v203_v45 = vld [vmem:[%s1874_s0 + $0x1c8] sm:$0xff]  ;;  %v188_v50 = vld [vmem:[%s1874_s0 + $0x150] sm:$0xff] }
  0x10   :  { %v1367_v42 = vmul.f32 0.001953125, %v752_v41  ;;  %v155_v47 = vld [vmem:[%s1874_s0 + $0x48] sm:$0xff]  ;;  %v204_v51 = vld [vmem:[%s1874_s0 + $0x1d0] sm:$0xff]  ;;  %v189_v56 = vld [vmem:[%s1874_s0 + $0x158] sm:$0xff] }
  0x11   :  { %v171_v48 = vld [vmem:[%s1874_s0 + $0xc8] sm:$0xff]  ;;  %v156_v53 = vld [vmem:[%s1874_s0 + $0x50] sm:$0xff]  ;;  %v205_v57 = vld [vmem:[%s1874_s0 + $0x1d8] sm:$0xff] }
  0x12   :  { %v755_v43 = vmul.f32 %v1367_v42, %v1367_v42  ;;  %v172_v54 = vld [vmem:[%s1874_s0 + $0xd0] sm:$0xff]  ;;  %v157_v58 = vld [vmem:[%s1874_s0 + $0x58] sm:$0xff]  ;;  %v190_v61 = vld [vmem:[%s1874_s0 + $0x160] sm:$0xff] }
  0x13   :  { %1137 = vmatmul.msk.f32.gmra.mxu2 %vm215_vm1, %v179_v9  ;;  %1153 = vmatmul.msk.f32.gmra.mxu3 %vm215_vm1, %v195_v10  ;;  %v173_v59 = vld [vmem:[%s1874_s0 + $0xd8] sm:$0xff]  ;;  %v206_v62 = vld [vmem:[%s1874_s0 + $0x1e0] sm:$0xff]  ;;  %v191_v3 = vld [vmem:[%s1874_s0 + $0x168] sm:$0xff] }
  0x14   :  { %v757_v46 = vrot.slane %v755_v43, 7  ;;  %v158_v63 = vld [vmem:[%s1874_s0 + $0x60] sm:$0xff]  ;;  %v207_v4 = vld [vmem:[%s1874_s0 + $0x1e8] sm:$0xff]  ;;  %v192_v9 = vld [vmem:[%s1874_s0 + $0x170] sm:$0xff] }
  0x15   :  { %1105 = vmatmul.msk.f32.gmra.mxu0 %vm215_vm1, %v147_v11  ;;  %1121 = vmatmul.msk.f32.gmra.mxu1 %vm215_vm1, %v163_v12  ;;  %v174_v0 = vld [vmem:[%s1874_s0 + $0xe0] sm:$0xff]  ;;  %v159_v5 = vld [vmem:[%s1874_s0 + $0x68] sm:$0xff]  ;;  %v208_v10 = vld [vmem:[%s1874_s0 + $0x1f0] sm:$0xff] }
  0x16   :  { %v759_v49 = vsub.f32 %v1367_v42, %v757_v46  ;;  %v175_v6 = vld [vmem:[%s1874_s0 + $0xe8] sm:$0xff]  ;;  %v160_v11 = vld [vmem:[%s1874_s0 + $0x70] sm:$0xff] }
  0x17   :  { %v176_v12 = vld [vmem:[%s1874_s0 + $0xf0] sm:$0xff] }
  0x18   :  { %v760_v52 = vmax.f32 %v759_v49, 0.0 }
  0x1a   :  { %v761_v55 = vadd.f32 1e-05, %v760_v52 }
  0x1b   :  { %1138 = vmatmul.msk.f32.gmra.mxu2 %vm215_vm1, %v180_v13  ;;  %1154 = vmatmul.msk.f32.gmra.mxu3 %vm215_vm1, %v196_v14 }
  0x1c   :  { %1183 = vrsqrt.f32 %v761_v55  ;;  %vm768_vm2 = vweird.f32 %v761_v55 }
  0x1d   :  { %1106 = vmatmul.msk.f32.gmra.mxu0 %vm215_vm1, %v148_v15  ;;  %1122 = vmatmul.msk.f32.gmra.mxu1 %vm215_vm1, %v164_v16  ;;  %v193_v15 = vld [vmem:[%s1874_s0 + $0x178] sm:$0xff] }
  0x1e   :  { %v209_v16 = vld [vmem:[%s1874_s0 + $0x1f8] sm:$0xff] }
  0x22   :  { %v1184_v60 = vpop.eup %1183 }
  0x23   :  { %1139 = vmatmul.msk.f32.gmra.mxu2 %vm215_vm1, %v181_v17  ;;  %1155 = vmatmul.msk.f32.gmra.mxu3 %vm215_vm1, %v197_v18  ;;  %v763_v1 = vmul.f32 %v1184_v60, %v761_v55  ;;  %vm769_vm3 = vweird.f32 %v1184_v60  ;;  %v161_v18 = vld [vmem:[%s1874_s0 + $0x78] sm:$0xff] }
  0x24   :  { %vm770_vm4 = vmor %vm768_vm2, %vm769_vm3 }
  0x25   :  { %1107 = vmatmul.msk.f32.gmra.mxu0 %vm215_vm1, %v149_v19  ;;  %1123 = vmatmul.msk.f32.gmra.mxu1 %vm215_vm1, %v165_v20  ;;  %v764_v2 = vmul.f32 %v1184_v60, %v763_v1  ;;  %v177_v19 = vld [vmem:[%s1874_s0 + $0xf8] sm:$0xff] }
  0x27   :  { %v765_v7 = vmul.f32 0.5, %v764_v2 }
  0x29   :  { %v766_v8 = vsub.f32 1.5, %v765_v7 }
  0x2b   :  { %1140 = vmatmul.msk.f32.gmra.mxu2 %vm215_vm1, %v182_v21  ;;  %1156 = vmatmul.msk.f32.gmra.mxu3 %vm215_vm1, %v198_v22  ;;  %v767_v13 = vmul.f32 %v1184_v60, %v766_v8 }
  0x2d   :  { %1108 = vmatmul.msk.f32.gmra.mxu0 %vm215_vm1, %v150_v23  ;;  %1124 = vmatmul.msk.f32.gmra.mxu1 %vm215_vm1, %v166_v24  ;;  %v771_v14 = vsel %vm770_vm4, %v1184_v60, %v767_v13 }
  0x2e   :  { %v902_v17 = vrot.slane %v771_v14, 1  ;;  %v1485_v21 = vperm.slane %v771_v14, 1 }
  0x30   :  { %v904_v20 = vmul.f32 %v902_v17, %v1367_v42 }
  0x32   :  { %v1487_v22 = vperm.slane %v904_v20, 0 }
  0x33   :  { %1141 = vmatmul.msk.f32.gmra.mxu2 %vm215_vm1, %v183_v25  ;;  %1157 = vmatmul.msk.f32.gmra.mxu3 %vm215_vm1, %v199_v26 }
  0x35   :  { %1109 = vmatmul.msk.f32.gmra.mxu0 %vm215_vm1, %v151_v27  ;;  %1125 = vmatmul.msk.f32.gmra.mxu1 %vm215_vm1, %v167_v28 }
  0x3b   :  { %1142 = vmatmul.msk.f32.gmra.mxu2 %vm215_vm1, %v184_v29  ;;  %1158 = vmatmul.msk.f32.gmra.mxu3 %vm215_vm1, %v200_v30 }
  0x3d   :  { %1110 = vmatmul.msk.f32.gmra.mxu0 %vm215_vm1, %v152_v31  ;;  %1126 = vmatmul.msk.f32.gmra.mxu1 %vm215_vm1, %v168_v32 }
  0x43   :  { %1143 = vmatmul.msk.f32.gmra.mxu2 %vm215_vm1, %v185_v33  ;;  %1159 = vmatmul.msk.f32.gmra.mxu3 %vm215_vm1, %v201_v34 }
  0x45   :  { %1111 = vmatmul.msk.f32.gmra.mxu0 %vm215_vm1, %v153_v35  ;;  %1127 = vmatmul.msk.f32.gmra.mxu1 %vm215_vm1, %v169_v36 }
  0x4b   :  { %1144 = vmatmul.msk.f32.gmra.mxu2 %vm215_vm1, %v186_v37  ;;  %1160 = vmatmul.msk.f32.gmra.mxu3 %vm215_vm1, %v202_v38 }
  0x4d   :  { %1112 = vmatmul.msk.f32.gmra.mxu0 %vm215_vm1, %v154_v39  ;;  %1128 = vmatmul.msk.f32.gmra.mxu1 %vm215_vm1, %v170_v40 }
  0x53   :  { %1145 = vmatmul.msk.f32.gmra.mxu2 %vm215_vm1, %v187_v44  ;;  %1161 = vmatmul.msk.f32.gmra.mxu3 %vm215_vm1, %v203_v45 }
  0x55   :  { %1113 = vmatmul.msk.f32.gmra.mxu0 %vm215_vm1, %v155_v47  ;;  %1129 = vmatmul.msk.f32.gmra.mxu1 %vm215_vm1, %v171_v48 }
  0x5b   :  { %1146 = vmatmul.msk.f32.gmra.mxu2 %vm215_vm1, %v188_v50  ;;  %1162 = vmatmul.msk.f32.gmra.mxu3 %vm215_vm1, %v204_v51 }
  0x5d   :  { %1114 = vmatmul.msk.f32.gmra.mxu0 %vm215_vm1, %v156_v53  ;;  %1130 = vmatmul.msk.f32.gmra.mxu1 %vm215_vm1, %v172_v54 }
  0x63   :  { %1147 = vmatmul.msk.f32.gmra.mxu2 %vm215_vm1, %v189_v56  ;;  %1163 = vmatmul.msk.f32.gmra.mxu3 %vm215_vm1, %v205_v57 }
  0x65   :  { %1115 = vmatmul.msk.f32.gmra.mxu0 %vm215_vm1, %v157_v58  ;;  %1131 = vmatmul.msk.f32.gmra.mxu1 %vm215_vm1, %v173_v59 }
  0x6b   :  { %1148 = vmatmul.msk.f32.gmra.mxu2 %vm215_vm1, %v190_v61  ;;  %1164 = vmatmul.msk.f32.gmra.mxu3 %vm215_vm1, %v206_v62 }
  0x6d   :  { %1116 = vmatmul.msk.f32.gmra.mxu0 %vm215_vm1, %v158_v63  ;;  %1132 = vmatmul.msk.f32.gmra.mxu1 %vm215_vm1, %v174_v0 }
  0x73   :  { %1149 = vmatmul.msk.f32.gmra.mxu2 %vm215_vm1, %v191_v3  ;;  %1165 = vmatmul.msk.f32.gmra.mxu3 %vm215_vm1, %v207_v4 }
  0x75   :  { %1117 = vmatmul.msk.f32.gmra.mxu0 %vm215_vm1, %v159_v5  ;;  %1133 = vmatmul.msk.f32.gmra.mxu1 %vm215_vm1, %v175_v6 }
  0x7b   :  { %1150 = vmatmul.msk.f32.gmra.mxu2 %vm215_vm1, %v192_v9  ;;  %1166 = vmatmul.msk.f32.gmra.mxu3 %vm215_vm1, %v208_v10 }
  0x7d   :  { %1118 = vmatmul.msk.f32.gmra.mxu0 %vm215_vm1, %v160_v11  ;;  %1134 = vmatmul.msk.f32.gmra.mxu1 %vm215_vm1, %v176_v12 }
  0x83   :  { %1151 = vmatmul.msk.f32.gmra.mxu2 %vm215_vm1, %v193_v15  ;;  %1167 = vmatmul.msk.f32.gmra.mxu3 %vm215_vm1, %v209_v16 }
  0x85   :  { %1119 = vmatmul.msk.f32.gmra.mxu0 %vm215_vm1, %v161_v18  ;;  %1135 = vmatmul.msk.f32.gmra.mxu1 %vm215_vm1, %v177_v19 }
  0x8a   :  { %v429_v23 = vpop.f32.mrf.mxu0  ;;  %v477_v24 = vpop.f32.mrf.mxu1 }
  0x8b   :  { %v837_v25 = vmul.f32 %v1485_v21, %v429_v23  ;;  %v853_v26 = vmul.f32 %v1485_v21, %v477_v24 }
  0x8d   :  { %v906_v27 = vsub.f32 %v837_v25, %v1487_v22  ;;  %v922_v28 = vsub.f32 %v853_v26, %v1487_v22 }
  0x8e   :  { %v525_v29 = vpop.f32.mrf.mxu2  ;;  %v573_v30 = vpop.f32.mrf.mxu3 }
  0x8f   :  { %v970_v31 = vmax.f32 %v906_v27, 0.0  ;;  %v986_v32 = vmax.f32 %v922_v28, 0.0  ;;  %v869_v33 = vmul.f32 %v1485_v21, %v525_v29  ;;  %v885_v34 = vmul.f32 %v1485_v21, %v573_v30 }
  0x91   :  { %1035 = vst.msk [vmem:[%s1876_s3] sm:$0xff] %vm1034_vm5, %v970_v31  ;;  %v938_v35 = vsub.f32 %v869_v33, %v1487_v22  ;;  %v954_v36 = vsub.f32 %v885_v34, %v1487_v22 }
  0x92   :  { %1051 = vst.msk [vmem:[%s1876_s3 + $0x80] sm:$0xff] %vm1034_vm5, %v986_v32  ;;  %v432_v37 = vpop.f32.mrf.mxu0  ;;  %v480_v38 = vpop.f32.mrf.mxu1 }
  0x93   :  { %v1002_v39 = vmax.f32 %v938_v35, 0.0  ;;  %v1018_v40 = vmax.f32 %v954_v36, 0.0  ;;  %v838_v41 = vmul.f32 %v1485_v21, %v432_v37  ;;  %v854_v42 = vmul.f32 %v1485_v21, %v480_v38 }
  0x95   :  { %1067 = vst.msk [vmem:[%s1876_s3 + $0x100] sm:$0xff] %vm1034_vm5, %v1002_v39  ;;  %v907_v43 = vsub.f32 %v838_v41, %v1487_v22  ;;  %v923_v44 = vsub.f32 %v854_v42, %v1487_v22 }
  0x96   :  { %1083 = vst.msk [vmem:[%s1876_s3 + $0x180] sm:$0xff] %vm1034_vm5, %v1018_v40  ;;  %v528_v45 = vpop.f32.mrf.mxu2  ;;  %v576_v46 = vpop.f32.mrf.mxu3 }
  0x97   :  { %v971_v47 = vmax.f32 %v907_v43, 0.0  ;;  %v987_v48 = vmax.f32 %v923_v44, 0.0  ;;  %v870_v49 = vmul.f32 %v1485_v21, %v528_v45  ;;  %v886_v50 = vmul.f32 %v1485_v21, %v576_v46 }
  0x99   :  { %1036 = vst.msk [vmem:[%s1876_s3 + $0x8] sm:$0xff] %vm1034_vm5, %v971_v47  ;;  %v939_v51 = vsub.f32 %v870_v49, %v1487_v22  ;;  %v955_v52 = vsub.f32 %v886_v50, %v1487_v22 }
  0x9a   :  { %1052 = vst.msk [vmem:[%s1876_s3 + $0x88] sm:$0xff] %vm1034_vm5, %v987_v48  ;;  %v435_v53 = vpop.f32.mrf.mxu0  ;;  %v483_v54 = vpop.f32.mrf.mxu1 }
  0x9b   :  { %v1003_v55 = vmax.f32 %v939_v51, 0.0  ;;  %v1019_v56 = vmax.f32 %v955_v52, 0.0  ;;  %v839_v57 = vmul.f32 %v1485_v21, %v435_v53  ;;  %v855_v58 = vmul.f32 %v1485_v21, %v483_v54 }
  0x9d   :  { %1068 = vst.msk [vmem:[%s1876_s3 + $0x108] sm:$0xff] %vm1034_vm5, %v1003_v55  ;;  %v908_v59 = vsub.f32 %v839_v57, %v1487_v22  ;;  %v924_v60 = vsub.f32 %v855_v58, %v1487_v22 }
  0x9e   :  { %1084 = vst.msk [vmem:[%s1876_s3 + $0x188] sm:$0xff] %vm1034_vm5, %v1019_v56  ;;  %v531_v61 = vpop.f32.mrf.mxu2  ;;  %v579_v62 = vpop.f32.mrf.mxu3 }
  0x9f   :  { %v972_v63 = vmax.f32 %v908_v59, 0.0  ;;  %v988_v0 = vmax.f32 %v924_v60, 0.0  ;;  %v871_v1 = vmul.f32 %v1485_v21, %v531_v61  ;;  %v887_v2 = vmul.f32 %v1485_v21, %v579_v62 }
  0xa1   :  { %1037 = vst.msk [vmem:[%s1876_s3 + $0x10] sm:$0xff] %vm1034_vm5, %v972_v63  ;;  %v940_v3 = vsub.f32 %v871_v1, %v1487_v22  ;;  %v956_v4 = vsub.f32 %v887_v2, %v1487_v22 }
  0xa2   :  { %1053 = vst.msk [vmem:[%s1876_s3 + $0x90] sm:$0xff] %vm1034_vm5, %v988_v0  ;;  %v438_v5 = vpop.f32.mrf.mxu0  ;;  %v486_v6 = vpop.f32.mrf.mxu1 }
  0xa3   :  { %v1004_v7 = vmax.f32 %v940_v3, 0.0  ;;  %v1020_v8 = vmax.f32 %v956_v4, 0.0  ;;  %v840_v9 = vmul.f32 %v1485_v21, %v438_v5  ;;  %v856_v10 = vmul.f32 %v1485_v21, %v486_v6 }
  0xa5   :  { %1069 = vst.msk [vmem:[%s1876_s3 + $0x110] sm:$0xff] %vm1034_vm5, %v1004_v7  ;;  %v909_v11 = vsub.f32 %v840_v9, %v1487_v22  ;;  %v925_v12 = vsub.f32 %v856_v10, %v1487_v22 }
  0xa6   :  { %1085 = vst.msk [vmem:[%s1876_s3 + $0x190] sm:$0xff] %vm1034_vm5, %v1020_v8  ;;  %v534_v13 = vpop.f32.mrf.mxu2  ;;  %v582_v14 = vpop.f32.mrf.mxu3 }
  0xa7   :  { %v973_v15 = vmax.f32 %v909_v11, 0.0  ;;  %v989_v16 = vmax.f32 %v925_v12, 0.0  ;;  %v872_v17 = vmul.f32 %v1485_v21, %v534_v13  ;;  %v888_v18 = vmul.f32 %v1485_v21, %v582_v14 }
  0xa9   :  { %1038 = vst.msk [vmem:[%s1876_s3 + $0x18] sm:$0xff] %vm1034_vm5, %v973_v15  ;;  %v941_v19 = vsub.f32 %v872_v17, %v1487_v22  ;;  %v957_v20 = vsub.f32 %v888_v18, %v1487_v22 }
  0xaa   :  { %1054 = vst.msk [vmem:[%s1876_s3 + $0x98] sm:$0xff] %vm1034_vm5, %v989_v16  ;;  %v441_v23 = vpop.f32.mrf.mxu0  ;;  %v489_v24 = vpop.f32.mrf.mxu1 }
  0xab   :  { %v1005_v25 = vmax.f32 %v941_v19, 0.0  ;;  %v1021_v26 = vmax.f32 %v957_v20, 0.0  ;;  %v841_v27 = vmul.f32 %v1485_v21, %v441_v23  ;;  %v857_v28 = vmul.f32 %v1485_v21, %v489_v24 }
  0xad   :  { %1070 = vst.msk [vmem:[%s1876_s3 + $0x118] sm:$0xff] %vm1034_vm5, %v1005_v25  ;;  %v910_v29 = vsub.f32 %v841_v27, %v1487_v22  ;;  %v926_v30 = vsub.f32 %v857_v28, %v1487_v22 }
  0xae   :  { %1086 = vst.msk [vmem:[%s1876_s3 + $0x198] sm:$0xff] %vm1034_vm5, %v1021_v26  ;;  %v537_v31 = vpop.f32.mrf.mxu2  ;;  %v585_v32 = vpop.f32.mrf.mxu3 }
  0xaf   :  { %v974_v33 = vmax.f32 %v910_v29, 0.0  ;;  %v990_v34 = vmax.f32 %v926_v30, 0.0  ;;  %v873_v35 = vmul.f32 %v1485_v21, %v537_v31  ;;  %v889_v36 = vmul.f32 %v1485_v21, %v585_v32 }
  0xb1   :  { %1039 = vst.msk [vmem:[%s1876_s3 + $0x20] sm:$0xff] %vm1034_vm5, %v974_v33  ;;  %v942_v37 = vsub.f32 %v873_v35, %v1487_v22  ;;  %v958_v38 = vsub.f32 %v889_v36, %v1487_v22 }
  0xb2   :  { %1055 = vst.msk [vmem:[%s1876_s3 + $0xa0] sm:$0xff] %vm1034_vm5, %v990_v34  ;;  %v444_v39 = vpop.f32.mrf.mxu0  ;;  %v492_v40 = vpop.f32.mrf.mxu1 }
  0xb3   :  { %v1006_v41 = vmax.f32 %v942_v37, 0.0  ;;  %v1022_v42 = vmax.f32 %v958_v38, 0.0  ;;  %v842_v43 = vmul.f32 %v1485_v21, %v444_v39  ;;  %v858_v44 = vmul.f32 %v1485_v21, %v492_v40 }
  0xb5   :  { %1071 = vst.msk [vmem:[%s1876_s3 + $0x120] sm:$0xff] %vm1034_vm5, %v1006_v41  ;;  %v911_v45 = vsub.f32 %v842_v43, %v1487_v22  ;;  %v927_v46 = vsub.f32 %v858_v44, %v1487_v22 }
  0xb6   :  { %1087 = vst.msk [vmem:[%s1876_s3 + $0x1a0] sm:$0xff] %vm1034_vm5, %v1022_v42  ;;  %v540_v47 = vpop.f32.mrf.mxu2  ;;  %v588_v48 = vpop.f32.mrf.mxu3 }
  0xb7   :  { %v975_v49 = vmax.f32 %v911_v45, 0.0  ;;  %v991_v50 = vmax.f32 %v927_v46, 0.0  ;;  %v874_v51 = vmul.f32 %v1485_v21, %v540_v47  ;;  %v890_v52 = vmul.f32 %v1485_v21, %v588_v48 }
  0xb9   :  { %1040 = vst.msk [vmem:[%s1876_s3 + $0x28] sm:$0xff] %vm1034_vm5, %v975_v49  ;;  %v943_v53 = vsub.f32 %v874_v51, %v1487_v22  ;;  %v959_v54 = vsub.f32 %v890_v52, %v1487_v22 }
  0xba   :  { %1056 = vst.msk [vmem:[%s1876_s3 + $0xa8] sm:$0xff] %vm1034_vm5, %v991_v50  ;;  %v447_v55 = vpop.f32.mrf.mxu0  ;;  %v495_v56 = vpop.f32.mrf.mxu1 }
  0xbb   :  { %v1007_v57 = vmax.f32 %v943_v53, 0.0  ;;  %v1023_v58 = vmax.f32 %v959_v54, 0.0  ;;  %v843_v59 = vmul.f32 %v1485_v21, %v447_v55  ;;  %v859_v60 = vmul.f32 %v1485_v21, %v495_v56 }
  0xbd   :  { %1072 = vst.msk [vmem:[%s1876_s3 + $0x128] sm:$0xff] %vm1034_vm5, %v1007_v57  ;;  %v912_v61 = vsub.f32 %v843_v59, %v1487_v22  ;;  %v928_v62 = vsub.f32 %v859_v60, %v1487_v22 }
  0xbe   :  { %1088 = vst.msk [vmem:[%s1876_s3 + $0x1a8] sm:$0xff] %vm1034_vm5, %v1023_v58  ;;  %v543_v63 = vpop.f32.mrf.mxu2  ;;  %v591_v0 = vpop.f32.mrf.mxu3 }
  0xbf   :  { %v976_v1 = vmax.f32 %v912_v61, 0.0  ;;  %v992_v2 = vmax.f32 %v928_v62, 0.0  ;;  %v875_v3 = vmul.f32 %v1485_v21, %v543_v63  ;;  %v891_v4 = vmul.f32 %v1485_v21, %v591_v0 }
  0xc1   :  { %1041 = vst.msk [vmem:[%s1876_s3 + $0x30] sm:$0xff] %vm1034_vm5, %v976_v1  ;;  %v944_v5 = vsub.f32 %v875_v3, %v1487_v22  ;;  %v960_v6 = vsub.f32 %v891_v4, %v1487_v22 }
  0xc2   :  { %1057 = vst.msk [vmem:[%s1876_s3 + $0xb0] sm:$0xff] %vm1034_vm5, %v992_v2  ;;  %v450_v7 = vpop.f32.mrf.mxu0  ;;  %v498_v8 = vpop.f32.mrf.mxu1 }
  0xc3   :  { %v1008_v9 = vmax.f32 %v944_v5, 0.0  ;;  %v1024_v10 = vmax.f32 %v960_v6, 0.0  ;;  %v844_v11 = vmul.f32 %v1485_v21, %v450_v7  ;;  %v860_v12 = vmul.f32 %v1485_v21, %v498_v8 }
  0xc5   :  { %1073 = vst.msk [vmem:[%s1876_s3 + $0x130] sm:$0xff] %vm1034_vm5, %v1008_v9  ;;  %v913_v13 = vsub.f32 %v844_v11, %v1487_v22  ;;  %v929_v14 = vsub.f32 %v860_v12, %v1487_v22 }
  0xc6   :  { %1089 = vst.msk [vmem:[%s1876_s3 + $0x1b0] sm:$0xff] %vm1034_vm5, %v1024_v10  ;;  %v546_v15 = vpop.f32.mrf.mxu2  ;;  %v594_v16 = vpop.f32.mrf.mxu3 }
  0xc7   :  { %v977_v17 = vmax.f32 %v913_v13, 0.0  ;;  %v993_v18 = vmax.f32 %v929_v14, 0.0  ;;  %v876_v19 = vmul.f32 %v1485_v21, %v546_v15  ;;  %v892_v20 = vmul.f32 %v1485_v21, %v594_v16 }
  0xc9   :  { %1042 = vst.msk [vmem:[%s1876_s3 + $0x38] sm:$0xff] %vm1034_vm5, %v977_v17  ;;  %v945_v23 = vsub.f32 %v876_v19, %v1487_v22  ;;  %v961_v24 = vsub.f32 %v892_v20, %v1487_v22 }
  0xca   :  { %1058 = vst.msk [vmem:[%s1876_s3 + $0xb8] sm:$0xff] %vm1034_vm5, %v993_v18  ;;  %v453_v25 = vpop.f32.mrf.mxu0  ;;  %v501_v26 = vpop.f32.mrf.mxu1 }
  0xcb   :  { %v1009_v27 = vmax.f32 %v945_v23, 0.0  ;;  %v1025_v28 = vmax.f32 %v961_v24, 0.0  ;;  %v845_v29 = vmul.f32 %v1485_v21, %v453_v25  ;;  %v861_v30 = vmul.f32 %v1485_v21, %v501_v26 }
  0xcd   :  { %1074 = vst.msk [vmem:[%s1876_s3 + $0x138] sm:$0xff] %vm1034_vm5, %v1009_v27  ;;  %v914_v31 = vsub.f32 %v845_v29, %v1487_v22  ;;  %v930_v32 = vsub.f32 %v861_v30, %v1487_v22 }
  0xce   :  { %1090 = vst.msk [vmem:[%s1876_s3 + $0x1b8] sm:$0xff] %vm1034_vm5, %v1025_v28  ;;  %v549_v33 = vpop.f32.mrf.mxu2  ;;  %v597_v34 = vpop.f32.mrf.mxu3 }
  0xcf   :  { %v978_v35 = vmax.f32 %v914_v31, 0.0  ;;  %v994_v36 = vmax.f32 %v930_v32, 0.0  ;;  %v877_v37 = vmul.f32 %v1485_v21, %v549_v33  ;;  %v893_v38 = vmul.f32 %v1485_v21, %v597_v34 }
  0xd1   :  { %1043 = vst.msk [vmem:[%s1876_s3 + $0x40] sm:$0xff] %vm1034_vm5, %v978_v35  ;;  %v946_v39 = vsub.f32 %v877_v37, %v1487_v22  ;;  %v962_v40 = vsub.f32 %v893_v38, %v1487_v22 }
  0xd2   :  { %1059 = vst.msk [vmem:[%s1876_s3 + $0xc0] sm:$0xff] %vm1034_vm5, %v994_v36  ;;  %v456_v41 = vpop.f32.mrf.mxu0  ;;  %v504_v42 = vpop.f32.mrf.mxu1 }
  0xd3   :  { %v1010_v43 = vmax.f32 %v946_v39, 0.0  ;;  %v1026_v44 = vmax.f32 %v962_v40, 0.0  ;;  %v846_v45 = vmul.f32 %v1485_v21, %v456_v41  ;;  %v862_v46 = vmul.f32 %v1485_v21, %v504_v42 }
  0xd5   :  { %1075 = vst.msk [vmem:[%s1876_s3 + $0x140] sm:$0xff] %vm1034_vm5, %v1010_v43  ;;  %v915_v47 = vsub.f32 %v846_v45, %v1487_v22  ;;  %v931_v48 = vsub.f32 %v862_v46, %v1487_v22 }
  0xd6   :  { %1091 = vst.msk [vmem:[%s1876_s3 + $0x1c0] sm:$0xff] %vm1034_vm5, %v1026_v44  ;;  %v552_v49 = vpop.f32.mrf.mxu2  ;;  %v600_v50 = vpop.f32.mrf.mxu3 }
  0xd7   :  { %v979_v51 = vmax.f32 %v915_v47, 0.0  ;;  %v995_v52 = vmax.f32 %v931_v48, 0.0  ;;  %v878_v53 = vmul.f32 %v1485_v21, %v552_v49  ;;  %v894_v54 = vmul.f32 %v1485_v21, %v600_v50 }
  0xd9   :  { %1044 = vst.msk [vmem:[%s1876_s3 + $0x48] sm:$0xff] %vm1034_vm5, %v979_v51  ;;  %v947_v55 = vsub.f32 %v878_v53, %v1487_v22  ;;  %v963_v56 = vsub.f32 %v894_v54, %v1487_v22 }
  0xda   :  { %1060 = vst.msk [vmem:[%s1876_s3 + $0xc8] sm:$0xff] %vm1034_vm5, %v995_v52  ;;  %v459_v57 = vpop.f32.mrf.mxu0  ;;  %v507_v58 = vpop.f32.mrf.mxu1 }
  0xdb   :  { %v1011_v59 = vmax.f32 %v947_v55, 0.0  ;;  %v1027_v60 = vmax.f32 %v963_v56, 0.0  ;;  %v847_v61 = vmul.f32 %v1485_v21, %v459_v57  ;;  %v863_v62 = vmul.f32 %v1485_v21, %v507_v58 }
  0xdd   :  { %1076 = vst.msk [vmem:[%s1876_s3 + $0x148] sm:$0xff] %vm1034_vm5, %v1011_v59  ;;  %v916_v63 = vsub.f32 %v847_v61, %v1487_v22  ;;  %v932_v0 = vsub.f32 %v863_v62, %v1487_v22 }
  0xde   :  { %1092 = vst.msk [vmem:[%s1876_s3 + $0x1c8] sm:$0xff] %vm1034_vm5, %v1027_v60  ;;  %v555_v1 = vpop.f32.mrf.mxu2  ;;  %v603_v2 = vpop.f32.mrf.mxu3 }
  0xdf   :  { %v980_v3 = vmax.f32 %v916_v63, 0.0  ;;  %v996_v4 = vmax.f32 %v932_v0, 0.0  ;;  %v879_v5 = vmul.f32 %v1485_v21, %v555_v1  ;;  %v895_v6 = vmul.f32 %v1485_v21, %v603_v2 }
  0xe1   :  { %1045 = vst.msk [vmem:[%s1876_s3 + $0x50] sm:$0xff] %vm1034_vm5, %v980_v3  ;;  %v948_v7 = vsub.f32 %v879_v5, %v1487_v22  ;;  %v964_v8 = vsub.f32 %v895_v6, %v1487_v22 }
  0xe2   :  { %1061 = vst.msk [vmem:[%s1876_s3 + $0xd0] sm:$0xff] %vm1034_vm5, %v996_v4  ;;  %v462_v9 = vpop.f32.mrf.mxu0  ;;  %v510_v10 = vpop.f32.mrf.mxu1 }
  0xe3   :  { %v1012_v11 = vmax.f32 %v948_v7, 0.0  ;;  %v1028_v12 = vmax.f32 %v964_v8, 0.0  ;;  %v848_v13 = vmul.f32 %v1485_v21, %v462_v9  ;;  %v864_v14 = vmul.f32 %v1485_v21, %v510_v10 }
  0xe5   :  { %1077 = vst.msk [vmem:[%s1876_s3 + $0x150] sm:$0xff] %vm1034_vm5, %v1012_v11  ;;  %v917_v15 = vsub.f32 %v848_v13, %v1487_v22  ;;  %v933_v16 = vsub.f32 %v864_v14, %v1487_v22 }
  0xe6   :  { %1093 = vst.msk [vmem:[%s1876_s3 + $0x1d0] sm:$0xff] %vm1034_vm5, %v1028_v12  ;;  %v558_v17 = vpop.f32.mrf.mxu2  ;;  %v606_v18 = vpop.f32.mrf.mxu3 }
  0xe7   :  { %v981_v19 = vmax.f32 %v917_v15, 0.0  ;;  %v997_v20 = vmax.f32 %v933_v16, 0.0  ;;  %v880_v23 = vmul.f32 %v1485_v21, %v558_v17  ;;  %v896_v24 = vmul.f32 %v1485_v21, %v606_v18 }
  0xe9   :  { %1046 = vst.msk [vmem:[%s1876_s3 + $0x58] sm:$0xff] %vm1034_vm5, %v981_v19  ;;  %v949_v25 = vsub.f32 %v880_v23, %v1487_v22  ;;  %v965_v26 = vsub.f32 %v896_v24, %v1487_v22 }
  0xea   :  { %1062 = vst.msk [vmem:[%s1876_s3 + $0xd8] sm:$0xff] %vm1034_vm5, %v997_v20  ;;  %v465_v27 = vpop.f32.mrf.mxu0  ;;  %v513_v28 = vpop.f32.mrf.mxu1 }
  0xeb   :  { %v1013_v29 = vmax.f32 %v949_v25, 0.0  ;;  %v1029_v30 = vmax.f32 %v965_v26, 0.0  ;;  %v849_v31 = vmul.f32 %v1485_v21, %v465_v27  ;;  %v865_v32 = vmul.f32 %v1485_v21, %v513_v28 }
  0xed   :  { %1078 = vst.msk [vmem:[%s1876_s3 + $0x158] sm:$0xff] %vm1034_vm5, %v1013_v29  ;;  %v918_v33 = vsub.f32 %v849_v31, %v1487_v22  ;;  %v934_v34 = vsub.f32 %v865_v32, %v1487_v22 }
  0xee   :  { %1094 = vst.msk [vmem:[%s1876_s3 + $0x1d8] sm:$0xff] %vm1034_vm5, %v1029_v30  ;;  %v561_v35 = vpop.f32.mrf.mxu2  ;;  %v609_v36 = vpop.f32.mrf.mxu3 }
  0xef   :  { %v982_v37 = vmax.f32 %v918_v33, 0.0  ;;  %v998_v38 = vmax.f32 %v934_v34, 0.0  ;;  %v881_v39 = vmul.f32 %v1485_v21, %v561_v35  ;;  %v897_v40 = vmul.f32 %v1485_v21, %v609_v36 }
  0xf1   :  { %1047 = vst.msk [vmem:[%s1876_s3 + $0x60] sm:$0xff] %vm1034_vm5, %v982_v37  ;;  %v950_v41 = vsub.f32 %v881_v39, %v1487_v22  ;;  %v966_v42 = vsub.f32 %v897_v40, %v1487_v22 }
  0xf2   :  { %1063 = vst.msk [vmem:[%s1876_s3 + $0xe0] sm:$0xff] %vm1034_vm5, %v998_v38  ;;  %v468_v43 = vpop.f32.mrf.mxu0  ;;  %v516_v44 = vpop.f32.mrf.mxu1 }
  0xf3   :  { %v1014_v45 = vmax.f32 %v950_v41, 0.0  ;;  %v1030_v46 = vmax.f32 %v966_v42, 0.0  ;;  %v850_v47 = vmul.f32 %v1485_v21, %v468_v43  ;;  %v866_v48 = vmul.f32 %v1485_v21, %v516_v44 }
  0xf5   :  { %1079 = vst.msk [vmem:[%s1876_s3 + $0x160] sm:$0xff] %vm1034_vm5, %v1014_v45  ;;  %v919_v49 = vsub.f32 %v850_v47, %v1487_v22  ;;  %v935_v50 = vsub.f32 %v866_v48, %v1487_v22 }
  0xf6   :  { %1095 = vst.msk [vmem:[%s1876_s3 + $0x1e0] sm:$0xff] %vm1034_vm5, %v1030_v46  ;;  %v564_v51 = vpop.f32.mrf.mxu2  ;;  %v612_v52 = vpop.f32.mrf.mxu3 }
  0xf7   :  { %v983_v53 = vmax.f32 %v919_v49, 0.0  ;;  %v999_v54 = vmax.f32 %v935_v50, 0.0  ;;  %v882_v55 = vmul.f32 %v1485_v21, %v564_v51  ;;  %v898_v56 = vmul.f32 %v1485_v21, %v612_v52 }
  0xf9   :  { %1048 = vst.msk [vmem:[%s1876_s3 + $0x68] sm:$0xff] %vm1034_vm5, %v983_v53  ;;  %v951_v57 = vsub.f32 %v882_v55, %v1487_v22  ;;  %v967_v58 = vsub.f32 %v898_v56, %v1487_v22 }
  0xfa   :  { %1064 = vst.msk [vmem:[%s1876_s3 + $0xe8] sm:$0xff] %vm1034_vm5, %v999_v54  ;;  %v471_v59 = vpop.f32.mrf.mxu0  ;;  %v519_v60 = vpop.f32.mrf.mxu1 }
  0xfb   :  { %v1015_v61 = vmax.f32 %v951_v57, 0.0  ;;  %v1031_v62 = vmax.f32 %v967_v58, 0.0  ;;  %v851_v63 = vmul.f32 %v1485_v21, %v471_v59  ;;  %v867_v0 = vmul.f32 %v1485_v21, %v519_v60 }
  0xfd   :  { %1080 = vst.msk [vmem:[%s1876_s3 + $0x168] sm:$0xff] %vm1034_vm5, %v1015_v61  ;;  %v920_v1 = vsub.f32 %v851_v63, %v1487_v22  ;;  %v936_v2 = vsub.f32 %v867_v0, %v1487_v22 }
  0xfe   :  { %1096 = vst.msk [vmem:[%s1876_s3 + $0x1e8] sm:$0xff] %vm1034_vm5, %v1031_v62  ;;  %v567_v3 = vpop.f32.mrf.mxu2  ;;  %v615_v4 = vpop.f32.mrf.mxu3 }
  0xff   :  { %v984_v5 = vmax.f32 %v920_v1, 0.0  ;;  %v1000_v6 = vmax.f32 %v936_v2, 0.0  ;;  %v883_v7 = vmul.f32 %v1485_v21, %v567_v3  ;;  %v899_v8 = vmul.f32 %v1485_v21, %v615_v4 }
 0x101   :  { %1049 = vst.msk [vmem:[%s1876_s3 + $0x70] sm:$0xff] %vm1034_vm5, %v984_v5  ;;  %v952_v9 = vsub.f32 %v883_v7, %v1487_v22  ;;  %v968_v10 = vsub.f32 %v899_v8, %v1487_v22 }
 0x102   :  { %1065 = vst.msk [vmem:[%s1876_s3 + $0xf0] sm:$0xff] %vm1034_vm5, %v1000_v6  ;;  %v474_v11 = vpop.f32.mrf.mxu0  ;;  %v522_v12 = vpop.f32.mrf.mxu1 }
 0x103   :  { %v1016_v13 = vmax.f32 %v952_v9, 0.0  ;;  %v1032_v14 = vmax.f32 %v968_v10, 0.0  ;;  %v852_v15 = vmul.f32 %v1485_v21, %v474_v11  ;;  %v868_v16 = vmul.f32 %v1485_v21, %v522_v12 }
 0x105   :  { %1081 = vst.msk [vmem:[%s1876_s3 + $0x170] sm:$0xff] %vm1034_vm5, %v1016_v13  ;;  %v921_v17 = vsub.f32 %v852_v15, %v1487_v22  ;;  %v937_v18 = vsub.f32 %v868_v16, %v1487_v22 }
 0x106   :  { %1097 = vst.msk [vmem:[%s1876_s3 + $0x1f0] sm:$0xff] %vm1034_vm5, %v1032_v14  ;;  %v570_v19 = vpop.f32.mrf.mxu2  ;;  %v618_v20 = vpop.f32.mrf.mxu3 }
 0x107   :  { %v985_v23 = vmax.f32 %v921_v17, 0.0  ;;  %v1001_v24 = vmax.f32 %v937_v18, 0.0  ;;  %v884_v25 = vmul.f32 %v1485_v21, %v570_v19  ;;  %v900_v26 = vmul.f32 %v1485_v21, %v618_v20 }
 0x109   :  { %1050 = vst.msk [vmem:[%s1876_s3 + $0x78] sm:$0xff] %vm1034_vm5, %v985_v23  ;;  %v953_v27 = vsub.f32 %v884_v25, %v1487_v22  ;;  %v969_v28 = vsub.f32 %v900_v26, %v1487_v22 }
 0x10a   :  { %1066 = vst.msk [vmem:[%s1876_s3 + $0xf8] sm:$0xff] %vm1034_vm5, %v1001_v24 }
 0x10b   :  { %v1017_v29 = vmax.f32 %v953_v27, 0.0  ;;  %v1033_v30 = vmax.f32 %v969_v28, 0.0 }
 0x10d   :  { %1082 = vst.msk [vmem:[%s1876_s3 + $0x178] sm:$0xff] %vm1034_vm5, %v1017_v29 }
 0x10e   :  { %1098 = vst.msk [vmem:[%s1876_s3 + $0x1f8] sm:$0xff] %vm1034_vm5, %v1033_v30 }

</bundles_post_ra>
